<compile_context>
chip_gen: v5e
topology: v5e:2x2
jax: 0.10.0
libtpu: 0.0.40
codegen_flags: <defaults>
</compile_context>

<pallas_src>
import jax
import jax.numpy as jnp
from jax.experimental import pallas as pl
from jax.experimental.pallas import tpu as pltpu

_LN_EPS = 1e-5  # norm1/norm2 and the Mlp inner LayerNorm all use eps=1e-5


# --------------------------------------------------------------------------
# Small helpers (VMEM budgeting, Buffered(1) fallback)
# --------------------------------------------------------------------------
def _round_up(x, m):
    return (x + m - 1) // m * m


def _phys_vmem_bytes():
    """Physical per-core VMEM; conservative 64 MiB (v7x) if the query fails."""
    try:
        info = pltpu.get_tpu_info()
        v = getattr(info, "vmem_capacity_bytes", None)
        if v:
            return int(v)
    except Exception:
        pass
    return 64 * 1024 * 1024


def _vmem_limit(need_bytes, phys):
    """Derived scoped-VMEM limit: actual need + headroom, capped below physical."""
    budget = int(need_bytes * 1.5) + (8 << 20)
    return max(16 << 20, min(budget, int(phys * 0.75)))


_BUFFERED_OK = True  # cache: does this Pallas accept pipeline_mode=pl.Buffered(1)?


def _const_spec(block_shape, use_buffered):
    """BlockSpec for a parameter fetched once (constant block index); optionally
    single-buffered to halve its resident VMEM footprint."""
    ndim = len(block_shape)
    index_map = lambda *_: (0,) * ndim
    if use_buffered:
        try:
            return pl.BlockSpec(block_shape, index_map,
                                pipeline_mode=pl.Buffered(1))
        except Exception:
            pass
    return pl.BlockSpec(block_shape, index_map)


def _call_with_buffered_fallback(build, *args):
    """Run build(True)(*args); on failure retry without Buffered(1) specs."""
    global _BUFFERED_OK
    if _BUFFERED_OK:
        try:
            return build(True)(*args)
        except Exception:
            _BUFFERED_OK = False
    return build(False)(*args)


# --------------------------------------------------------------------------
# Kernels
# --------------------------------------------------------------------------
def _attn_block_kernel(x_ref, g1_ref, b1_ref, wq_ref, wk_ref, wv_ref, wp_ref,
                       bp_ref, o_ref, xn_ref, acc_ref):
    """One (batch, head) grid step: LN1 (once per batch) -> one attention head
    -> accumulate its projection contribution; residual add on the last head.

    Heads are a grid axis, so there are no sub-128 lane slices, no lane-dim
    concatenate and no in-kernel transposes.  acc_ref / xn_ref persist across
    the head sweep (output BlockSpec is constant over the head axis).
    """
    h = pl.program_id(1)

    @pl.when(h == 0)
    def _():
        # LayerNorm1 computed once per batch element, reused by every head.
        x = x_ref[0].astype(jnp.float32)
        mu = jnp.mean(x, axis=-1, keepdims=True)
        var = jnp.mean(jnp.square(x - mu), axis=-1, keepdims=True)
        xn = (x - mu) * jax.lax.rsqrt(var + _LN_EPS)
        xn_ref[...] = xn * g1_ref[...] + b1_ref[...]
        acc_ref[...] = jnp.zeros_like(acc_ref)

    dt = wq_ref.dtype                                   # bf16 weights -> bf16 MXU path
    xn = xn_ref[...].astype(dt)

    # 1/sqrt(hd) is folded into wq by the wrapper (no [N,N] VALU scaling here).
    q = jnp.dot(xn, wq_ref[0], preferred_element_type=jnp.float32)   # [N, hd]
    k = jnp.dot(xn, wk_ref[0], preferred_element_type=jnp.float32)   # [N, hd]
    v = jnp.dot(xn, wv_ref[0], preferred_element_type=jnp.float32)   # [N, hd]

    s = jax.lax.dot_general(q.astype(dt), k.astype(dt),
                            (((1,), (1,)), ((), ())),
                            preferred_element_type=jnp.float32)      # [N, N]
    s = s - jnp.max(s, axis=-1, keepdims=True)
    p = jnp.exp(s)
    # divide -> EUP reciprocal + VALU multiply (keeps VALU slot free)
    p = p * pl.reciprocal(jnp.sum(p, axis=-1, keepdims=True), approx=True)

    o = jnp.dot(p.astype(dt), v.astype(dt),
                preferred_element_type=jnp.float32)                  # [N, hd]
    # per-head projection contribution (sublane-organized wp rows), accumulated
    acc_ref[...] += jnp.dot(o.astype(dt), wp_ref[0],
                            preferred_element_type=jnp.float32)      # [N, C]

    @pl.when(h == pl.num_programs(1) - 1)
    def _():
        o_ref[0] = (x_ref[0].astype(jnp.float32) + acc_ref[...] + bp_ref[...]
                    ).astype(o_ref.dtype)


def _mlp_block_kernel(x_ref, g2_ref, b2_ref, w1_ref, bb1_ref, gh_ref, bh_ref,
                      w2_ref, bb2_ref, o_ref):
    """Fused: LayerNorm2 -> fc1 -> erf-GELU -> LayerNorm(hidden) -> fc2 -> residual.
    Processes one [tm, C] row tile per grid step (weights VMEM-resident)."""
    x = x_ref[...].astype(jnp.float32)                      # [tm, C]

    # norm2 (two-pass stats kept for numerical robustness; one-pass E[x^2]-mu^2
    # is an optional XLU/VALU micro-opt per the review)
    mu = jnp.mean(x, axis=-1, keepdims=True)
    var = jnp.mean(jnp.square(x - mu), axis=-1, keepdims=True)
    xn = (x - mu) * jax.lax.rsqrt(var + _LN_EPS)
    xn = xn * g2_ref[...] + b2_ref[...]

    # fc1 + exact (erf) GELU  -- matches nn.GELU() default
    h = jnp.dot(xn.astype(w1_ref.dtype), w1_ref[...],
                preferred_element_type=jnp.float32) + bb1_ref[...]
    h = jax.nn.gelu(h, approximate=False)

    # Mlp's internal LayerNorm over the hidden dim (use_ln=True inside Block)
    hmu = jnp.mean(h, axis=-1, keepdims=True)
    hvar = jnp.mean(jnp.square(h - hmu), axis=-1, keepdims=True)
    h = (h - hmu) * jax.lax.rsqrt(hvar + _LN_EPS) * gh_ref[...] + bh_ref[...]

    # fc2 (+ residual); cast to the weight dtype so bf16 weights hit the bf16 MXU
    y = jnp.dot(h.astype(w2_ref.dtype), w2_ref[...],
                preferred_element_type=jnp.float32) + bb2_ref[...]
    o_ref[...] = (x + y).astype(o_ref.dtype)


# --------------------------------------------------------------------------
# Wrappers
# --------------------------------------------------------------------------
def prepare_attention_weights(wqkv, wproj, num_heads):
    """Re-pack the [C, 3C] qkv weight (torch column order [q|k|v], head-major)
    and the [C, C] proj weight into head-major arrays, folding the softmax
    scale into wq.  Plain-JAX reshapes, done once per weight set (offline)."""
    c = wqkv.shape[0]
    hd = c // num_heads
    w3 = wqkv.reshape(c, 3, num_heads, hd).transpose(1, 2, 0, 3)   # [3, nh, C, hd]
    scale = float(hd) ** -0.5
    wq = (w3[0].astype(jnp.float32) * scale).astype(wqkv.dtype)    # fold 1/sqrt(hd)
    wk = w3[1]
    wv = w3[2]
    wp = wproj.reshape(num_heads, hd, c)                           # [nh, hd, C]
    return wq, wk, wv, wp


def attention_block(x, gamma1, beta1, wq, wk, wv, wp, bproj):
    """x: [B, N, C] -> x + Attention(LayerNorm1(x)) : [B, N, C]"""
    b, n, c = x.shape
    nh, _, hd = wq.shape
    w_bytes = wq.dtype.itemsize
    x_bytes = x.dtype.itemsize
    phys = _phys_vmem_bytes()

    need = (2 * w_bytes * 4 * c * hd          # per-head weight blocks (double-buffered)
            + 4 * 3 * c                       # LN params + proj bias
            + 2 * 2 * x_bytes * n * c         # x / out blocks (double-buffered)
            + 2 * 4 * n * c                   # xn + acc scratch (f32)
            + 4 * (n * n + 3 * n * hd + 2 * n * c))   # live intermediates
    vmem = _vmem_limit(need, phys)

    cost = pl.CostEstimate(
        flops=int(b * (8 * n * c * c + 4 * n * n * c)),
        transcendentals=int(b * nh * n * n),                 # exp in softmax
        bytes_accessed=int(2 * b * n * c * x_bytes + 4 * c * c * w_bytes + 4 * 3 * c))

    def build(use_buffered):
        head_spec = lambda shape: pl.BlockSpec(shape, lambda i, j: (j, 0, 0))
        return pl.pallas_call(
            _attn_block_kernel,
            out_shape=jax.ShapeDtypeStruct((b, n, c), x.dtype),
            grid_spec=pltpu.PrefetchScalarGridSpec(
                num_scalar_prefetch=0,
                grid=(b, nh),
                in_specs=[
                    pl.BlockSpec((1, n, c), lambda i, j: (i, 0, 0)),  # x (once per batch)
                    _const_spec((1, c), use_buffered),                # norm1 gamma
                    _const_spec((1, c), use_buffered),                # norm1 beta
                    head_spec((1, c, hd)),                            # wq (scale folded)
                    head_spec((1, c, hd)),                            # wk
                    head_spec((1, c, hd)),                            # wv
                    head_spec((1, hd, c)),                            # proj rows of head h
                    _const_spec((1, c), use_buffered),                # proj bias
                ],
                out_specs=pl.BlockSpec((1, n, c), lambda i, j: (i, 0, 0)),
                scratch_shapes=[pltpu.VMEM((n, c), jnp.float32),      # LN1(x)
                                pltpu.VMEM((n, c), jnp.float32)],     # head accumulator
            ),
            compiler_params=pltpu.CompilerParams(
                dimension_semantics=("parallel", "arbitrary"),
                vmem_limit_bytes=vmem,
            ),
            cost_estimate=cost,
        )

    return _call_with_buffered_fallback(build, x, gamma1, beta1,
                                        wq, wk, wv, wp, bproj)


def _mlp_need_bytes(tm, c, hdim, w_bytes, x_bytes, single_buf):
    wfac = 1 if single_buf else 2
    weights = wfac * w_bytes * (2 * c * hdim) + 4 * (2 * hdim + 4 * c)
    io = 2 * 2 * x_bytes * tm * c              # x / out tiles, double-buffered
    live = 4 * (tm * hdim + 4 * tm * c)        # f32 intermediates
    return weights + io + live


def _choose_row_tile(m, c, hdim, w_bytes, x_bytes, phys, single_buf=True):
    """Row-tile: multiple of 8, MXU-friendly (prefer 512/256 on v6e/v7x), sized
    to the VMEM budget.  m need NOT divide evenly (Pallas masks the last tile)."""
    m8 = _round_up(m, 8)
    budget = int(phys * 0.6)
    if m8 <= 512 and _mlp_need_bytes(m8, c, hdim, w_bytes, x_bytes, single_buf) <= budget:
        return m8
    for t in (512, 256, 128, 64, 32, 16, 8):
        if t <= m8 and _mlp_need_bytes(t, c, hdim, w_bytes, x_bytes, single_buf) <= budget:
            return t
    return 8


def mlp_block(x, gamma2, beta2, w1, b1, gamma_h, beta_h, w2, b2, *, tm=None):
    """x: [M, C] -> x + Mlp(LayerNorm2(x)) : [M, C]   (Mlp has an inner LN)"""
    m, c = x.shape
    hdim = w1.shape[1]
    w_bytes = w1.dtype.itemsize
    x_bytes = x.dtype.itemsize
    phys = _phys_vmem_bytes()
    if tm is None:
        tm = _choose_row_tile(m, c, hdim, w_bytes, x_bytes, phys)
    grid = (pl.cdiv(m, tm),)
    # budget for the limit assumes the double-buffered (fallback) weight case
    vmem = _vmem_limit(_mlp_need_bytes(tm, c, hdim, w_bytes, x_bytes, False), phys)

    cost = pl.CostEstimate(
        flops=int(4 * m * c * hdim),                      # fc1 + fc2
        transcendentals=int(m * hdim),                    # erf in GELU
        bytes_accessed=int(2 * m * c * x_bytes + 2 * c * hdim * w_bytes
                           + 4 * (2 * hdim + 4 * c)))

    def build(use_buffered):
        return pl.pallas_call(
            _mlp_block_kernel,
            out_shape=jax.ShapeDtypeStruct((m, c), x.dtype),
            grid_spec=pltpu.PrefetchScalarGridSpec(
                num_scalar_prefetch=0,
                grid=grid,
                in_specs=[
                    pl.BlockSpec((tm, c), lambda i: (i, 0)),       # x row tile (pipelined)
                    _const_spec((1, c), use_buffered),             # norm2 gamma
                    _const_spec((1, c), use_buffered),             # norm2 beta
                    _const_spec((c, hdim), use_buffered),          # fc1 weight (resident)
                    _const_spec((1, hdim), use_buffered),          # fc1 bias
                    _const_spec((1, hdim), use_buffered),          # hidden LN gamma
                    _const_spec((1, hdim), use_buffered),          # hidden LN beta
                    _const_spec((hdim, c), use_buffered),          # fc2 weight (resident)
                    _const_spec((1, c), use_buffered),             # fc2 bias
                ],
                out_specs=pl.BlockSpec((tm, c), lambda i: (i, 0)),
            ),
            compiler_params=pltpu.CompilerParams(
                dimension_semantics=("parallel",),
                vmem_limit_bytes=vmem,
            ),
            cost_estimate=cost,
        )

    return _call_with_buffered_fallback(
        build, x, gamma2, beta2, w1, b1, gamma_h, beta_h, w2, b2)


def block_forward(x, params, *, num_heads, tm=None):
    """Full Block forward: x [B, N, C] -> [B, N, C]."""
    b, n, c = x.shape
    wq, wk, wv, wp = prepare_attention_weights(params["wqkv"], params["wproj"],
                                               num_heads)
    y = attention_block(x, params["gamma1"], params["beta1"],
                        wq, wk, wv, wp, params["bproj"])
    out2d = mlp_block(y.reshape(b * n, c), params["gamma2"], params["beta2"],
                      params["w1"], params["b1"],
                      params["gamma_h"], params["beta_h"],
                      params["w2"], params["b2"], tm=tm)
    return out2d.reshape(b, n, c)


# --------------------------------------------------------------------------
# Pure-JAX reference + init helpers
# --------------------------------------------------------------------------
def block_reference(x, params, *, num_heads):
    def ln(v, g, b):
        mu = jnp.mean(v, axis=-1, keepdims=True)
        var = jnp.mean(jnp.square(v - mu), axis=-1, keepdims=True)
        return (v - mu) * jax.lax.rsqrt(var + _LN_EPS) * g + b

    bsz, n, c = x.shape
    hd = c // num_heads
    # attention branch
    xn = ln(x, params["gamma1"], params["beta1"])
    qkv = xn @ params["wqkv"]
    qkv = qkv.reshape(bsz, n, 3, num_heads, hd).transpose(2, 0, 3, 1, 4)
    q, k, v = qkv[0], qkv[1], qkv[2]
    attn = jnp.einsum("bhid,bhjd->bhij", q, k) * (hd ** -0.5)
    attn = jax.nn.softmax(attn, axis=-1)
    a = jnp.einsum("bhij,bhjd->bhid", attn, v)
    a = a.transpose(0, 2, 1, 3).reshape(bsz, n, c)
    a = a @ params["wproj"] + params["bproj"]
    x = x + a
    # mlp branch (fc1 -> GELU -> LN(hidden) -> fc2)
    yn = ln(x, params["gamma2"], params["beta2"])
    h = yn @ params["w1"] + params["b1"]
    h = jax.nn.gelu(h, approximate=False)
    h = ln(h, params["gamma_h"], params["beta_h"])
    y = h @ params["w2"] + params["b2"]
    return x + y


def trunc_normal(key, shape, std=0.02, dtype=jnp.float32):
    # torch.nn.init.trunc_normal_(std=0.02, a=-2.0, b=2.0) truncates at the
    # ABSOLUTE values +/-2 (= +/-100 sigma for std=0.02), effectively an
    # untruncated normal scaled by std.
    lo, hi = -2.0 / std, 2.0 / std
    return (jax.random.truncated_normal(key, lo, hi, shape) * std).astype(dtype)


# --------------------------------------------------------------------------
# Demo / self-test
# --------------------------------------------------------------------------
if __name__ == "__main__":
    # Small, lane-dense shapes (dim and hidden are multiples of 128).
    batch, seq, dim, num_heads = 2, 32, 128, 8
    hidden = dim * 4  # mlp_ratio=4.0 -> 512

    root = jax.random.PRNGKey(0)
    kx, kqkv, kproj, k1, k2 = jax.random.split(root, 5)

    x = jax.random.normal(kx, (batch, seq, dim), dtype=jnp.float32)

    # Parameters mirroring Block.__init__ (weights stored transposed, [in, out]).
    params = dict(
        gamma1=jnp.ones((1, dim), jnp.float32),
        beta1=jnp.zeros((1, dim), jnp.float32),
        wqkv=trunc_normal(kqkv, (dim, 3 * dim)),       # qkv_bias=False
        wproj=trunc_normal(kproj, (dim, dim)),
        bproj=jnp.zeros((1, dim), jnp.float32),
        gamma2=jnp.ones((1, dim), jnp.float32),
        beta2=jnp.zeros((1, dim), jnp.float32),
        w1=trunc_normal(k1, (dim, hidden)),
        b1=jnp.zeros((1, hidden), jnp.float32),
        gamma_h=jnp.ones((1, hidden), jnp.float32),    # Mlp's inner LayerNorm
        beta_h=jnp.zeros((1, hidden), jnp.float32),
        w2=trunc_normal(k2, (hidden, dim)),
        b2=jnp.zeros((1, dim), jnp.float32),
    )

    # ---- f32 path: tight correctness check (approx reciprocal in the softmax
    #      contributes a few e-4 of absolute error).
    out = block_forward(x, params, num_heads=num_heads)
    jax.block_until_ready(out)
    ref = block_reference(x, params, num_heads=num_heads)
    assert out.shape == (batch, seq, dim)
    err = float(jnp.max(jnp.abs(out - ref)))
    assert jnp.allclose(out, ref, atol=2e-3, rtol=2e-3), \
        f"f32 mismatch vs reference (max abs err {err})"

    # ---- bf16-weight path (bf16 MXU on v6e/v7x); compare against f32 math on
    #      the same bf16-rounded parameters with a loose tolerance.
    cast_keys = ("wqkv", "wproj", "bproj", "w1", "b1", "w2", "b2")
    params_bf16 = {k: (v.astype(jnp.bfloat16) if k in cast_keys else v)
                   for k, v in params.items()}
    x_bf16 = x.astype(jnp.bfloat16)
    out_bf16 = block_forward(x_bf16, params_bf16, num_heads=num_heads)
    jax.block_until_ready(out_bf16)
    params_ref = {k: v.astype(jnp.float32) for k, v in params_bf16.items()}
    ref_bf16 = block_reference(x_bf16.astype(jnp.float32), params_ref,
                               num_heads=num_heads)
    out_bf16_f32 = out_bf16.astype(jnp.float32)
    err_bf16 = float(jnp.max(jnp.abs(out_bf16_f32 - ref_bf16)))
    assert jnp.allclose(out_bf16_f32, ref_bf16, atol=1e-1, rtol=1e-1), \
        f"bf16 mismatch vs reference (max abs err {err_bf16})"

    print("KERNEL_OK")
</pallas_src>

<mosaic_0001>
module attributes {stable_mosaic.version = 11 : i64} {
  func.func @_attn_block_kernel(%arg0: i32, %arg1: i32, %arg2: memref<1x32x128xf32, #tpu.memory_space<vmem>>, %arg3: memref<1x128xf32, #tpu.memory_space<vmem>>, %arg4: memref<1x128xf32, #tpu.memory_space<vmem>>, %arg5: memref<1x128x16xf32, #tpu.memory_space<vmem>>, %arg6: memref<1x128x16xf32, #tpu.memory_space<vmem>>, %arg7: memref<1x128x16xf32, #tpu.memory_space<vmem>>, %arg8: memref<1x16x128xf32, #tpu.memory_space<vmem>>, %arg9: memref<1x128xf32, #tpu.memory_space<vmem>>, %arg10: memref<1x32x128xf32, #tpu.memory_space<vmem>>, %arg11: memref<32x128xf32, #tpu.memory_space<vmem>>, %arg12: memref<32x128xf32, #tpu.memory_space<vmem>>) attributes {dimension_semantics = [#tpu.dimension_semantics<parallel>, #tpu.dimension_semantics<arbitrary>], iteration_bounds = array<i64: 2, 8>, scalar_prefetch = 0 : i64, scratch_operands = 2 : i64, tpu.core_type = #tpu.core_type<tc>, window_params = [{transform_indices = @transform_0, window_bounds = array<i64: 1, 32, 128>}, {pipeline_mode = #tpu.pipeline_mode<synchronous>, transform_indices = @transform_1, window_bounds = array<i64: 1, 128>}, {pipeline_mode = #tpu.pipeline_mode<synchronous>, transform_indices = @transform_2, window_bounds = array<i64: 1, 128>}, {transform_indices = @transform_3, window_bounds = array<i64: 1, 128, 16>}, {transform_indices = @transform_4, window_bounds = array<i64: 1, 128, 16>}, {transform_indices = @transform_5, window_bounds = array<i64: 1, 128, 16>}, {transform_indices = @transform_6, window_bounds = array<i64: 1, 16, 128>}, {pipeline_mode = #tpu.pipeline_mode<synchronous>, transform_indices = @transform_7, window_bounds = array<i64: 1, 128>}, {transform_indices = @transform_8, window_bounds = array<i64: 1, 32, 128>}]} {
    %c0_i32 = arith.constant 0 : i32
    %0 = arith.cmpi eq, %arg1, %c0_i32 : i32
    %1 = arith.extui %0 : i1 to i32
    %c0_i32_0 = arith.constant 0 : i32
    %2 = arith.cmpi ne, %1, %c0_i32_0 : i32
    scf.if %2 {
      %c0_26 = arith.constant 0 : index
      %c0_27 = arith.constant 0 : index
      %c0_28 = arith.constant 0 : index
      %34 = vector.load %arg2[%c0_26, %c0_27, %c0_28] : memref<1x32x128xf32, #tpu.memory_space<vmem>>, vector<1x32x128xf32>
      %35 = vector.shape_cast %34 : vector<1x32x128xf32> to vector<32x128xf32>
      %cst_29 = arith.constant dense<0.000000e+00> : vector<32xf32>
      %36 = vector.multi_reduction <add>, %35, %cst_29 [1] : vector<32x128xf32> to vector<32xf32>
      %37 = vector.shape_cast %36 : vector<32xf32> to vector<32x1xf32>
      %cst_30 = arith.constant 1.280000e+02 : f32
      %38 = vector.broadcast %cst_30 : f32 to vector<32x1xf32>
      %39 = arith.divf %37, %38 : vector<32x1xf32>
      %40 = vector.broadcast %39 : vector<32x1xf32> to vector<32x128xf32>
      %41 = arith.subf %35, %40 : vector<32x128xf32>
      %42 = arith.mulf %41, %41 : vector<32x128xf32>
      %cst_31 = arith.constant dense<0.000000e+00> : vector<32xf32>
      %43 = vector.multi_reduction <add>, %42, %cst_31 [1] : vector<32x128xf32> to vector<32xf32>
      %44 = vector.shape_cast %43 : vector<32xf32> to vector<32x1xf32>
      %cst_32 = arith.constant 1.280000e+02 : f32
      %45 = vector.broadcast %cst_32 : f32 to vector<32x1xf32>
      %46 = arith.divf %44, %45 : vector<32x1xf32>
      %47 = vector.broadcast %39 : vector<32x1xf32> to vector<32x128xf32>
      %48 = arith.subf %35, %47 : vector<32x128xf32>
      %cst_33 = arith.constant 9.99999974E-6 : f32
      %49 = vector.broadcast %cst_33 : f32 to vector<32x1xf32>
      %50 = arith.addf %46, %49 : vector<32x1xf32>
      %51 = math.rsqrt %50 : vector<32x1xf32>
      %52 = vector.broadcast %51 : vector<32x1xf32> to vector<32x128xf32>
      %53 = arith.mulf %48, %52 : vector<32x128xf32>
      %c0_34 = arith.constant 0 : index
      %c0_35 = arith.constant 0 : index
      %54 = vector.load %arg3[%c0_34, %c0_35] : memref<1x128xf32, #tpu.memory_space<vmem>>, vector<1x128xf32>
      %55 = vector.broadcast %54 : vector<1x128xf32> to vector<32x128xf32>
      %56 = arith.mulf %53, %55 : vector<32x128xf32>
      %c0_36 = arith.constant 0 : index
      %c0_37 = arith.constant 0 : index
      %57 = vector.load %arg4[%c0_36, %c0_37] : memref<1x128xf32, #tpu.memory_space<vmem>>, vector<1x128xf32>
      %58 = vector.broadcast %57 : vector<1x128xf32> to vector<32x128xf32>
      %59 = arith.addf %56, %58 : vector<32x128xf32>
      %c0_38 = arith.constant 0 : index
      %c0_39 = arith.constant 0 : index
      %60 = vector.load %arg11[%c0_38, %c0_39] : memref<32x128xf32, #tpu.memory_space<vmem>>, vector<32x128xf32>
      tpu.vector_store %arg11[%c0_38, %c0_39], %59 {strides = array<i32>} : memref<32x128xf32, #tpu.memory_space<vmem>>, vector<32x128xf32>,
      %cst_40 = arith.constant 0.000000e+00 : f32
      %61 = vector.broadcast %cst_40 : f32 to vector<32x128xf32>
      %c0_41 = arith.constant 0 : index
      %c0_42 = arith.constant 0 : index
      %62 = vector.load %arg12[%c0_41, %c0_42] : memref<32x128xf32, #tpu.memory_space<vmem>>, vector<32x128xf32>
      tpu.vector_store %arg12[%c0_41, %c0_42], %61 {strides = array<i32>} : memref<32x128xf32, #tpu.memory_space<vmem>>, vector<32x128xf32>,
    } else {
    }
    %c0 = arith.constant 0 : index
    %c0_1 = arith.constant 0 : index
    %3 = vector.load %arg11[%c0, %c0_1] : memref<32x128xf32, #tpu.memory_space<vmem>>, vector<32x128xf32>
    %c0_2 = arith.constant 0 : index
    %c0_3 = arith.constant 0 : index
    %c0_4 = arith.constant 0 : index
    %4 = vector.load %arg5[%c0_2, %c0_3, %c0_4] : memref<1x128x16xf32, #tpu.memory_space<vmem>>, vector<1x128x16xf32>
    %5 = vector.shape_cast %4 : vector<1x128x16xf32> to vector<128x16xf32>
    %cst = arith.constant dense<0.000000e+00> : vector<32x16xf32>
    %6 = tpu.matmul %3, %5, %cst {dimension_numbers = #tpu.dot_dimension_numbers<[1], [0], [0], [1], [0, 0, 1, 1], [], []>} : vector<32x128xf32>, vector<128x16xf32>, vector<32x16xf32> -> vector<32x16xf32>
    %c0_5 = arith.constant 0 : index
    %c0_6 = arith.constant 0 : index
    %c0_7 = arith.constant 0 : index
    %7 = vector.load %arg6[%c0_5, %c0_6, %c0_7] : memref<1x128x16xf32, #tpu.memory_space<vmem>>, vector<1x128x16xf32>
    %8 = vector.shape_cast %7 : vector<1x128x16xf32> to vector<128x16xf32>
    %cst_8 = arith.constant dense<0.000000e+00> : vector<32x16xf32>
    %9 = tpu.matmul %3, %8, %cst_8 {dimension_numbers = #tpu.dot_dimension_numbers<[1], [0], [0], [1], [0, 0, 1, 1], [], []>} : vector<32x128xf32>, vector<128x16xf32>, vector<32x16xf32> -> vector<32x16xf32>
    %c0_9 = arith.constant 0 : index
    %c0_10 = arith.constant 0 : index
    %c0_11 = arith.constant 0 : index
    %10 = vector.load %arg7[%c0_9, %c0_10, %c0_11] : memref<1x128x16xf32, #tpu.memory_space<vmem>>, vector<1x128x16xf32>
    %11 = vector.shape_cast %10 : vector<1x128x16xf32> to vector<128x16xf32>
    %cst_12 = arith.constant dense<0.000000e+00> : vector<32x16xf32>
    %12 = tpu.matmul %3, %11, %cst_12 {dimension_numbers = #tpu.dot_dimension_numbers<[1], [0], [0], [1], [0, 0, 1, 1], [], []>} : vector<32x128xf32>, vector<128x16xf32>, vector<32x16xf32> -> vector<32x16xf32>
    %cst_13 = arith.constant dense<0.000000e+00> : vector<32x32xf32>
    %13 = tpu.matmul %6, %9, %cst_13 {dimension_numbers = #tpu.dot_dimension_numbers<[1], [1], [0], [0], [0, 0, 1, 0], [], []>} : vector<32x16xf32>, vector<32x16xf32>, vector<32x32xf32> -> vector<32x32xf32>
    %cst_14 = arith.constant dense<0xFF800000> : vector<32xf32>
    %14 = vector.multi_reduction <maximumf>, %13, %cst_14 [1] : vector<32x32xf32> to vector<32xf32>
    %15 = vector.shape_cast %14 : vector<32xf32> to vector<32x1xf32>
    %16 = vector.broadcast %15 : vector<32x1xf32> to vector<32x32xf32>
    %17 = arith.subf %13, %16 : vector<32x32xf32>
    %18 = math.exp %17 : vector<32x32xf32>
    %cst_15 = arith.constant dense<0.000000e+00> : vector<32xf32>
    %19 = vector.multi_reduction <add>, %18, %cst_15 [1] : vector<32x32xf32> to vector<32xf32>
    %20 = vector.shape_cast %19 : vector<32xf32> to vector<32x1xf32>
    %21 = tpu.reciprocal %20 {approx = true} : vector<32x1xf32> -> vector<32x1xf32>
    %22 = vector.broadcast %21 : vector<32x1xf32> to vector<32x32xf32>
    %23 = arith.mulf %18, %22 : vector<32x32xf32>
    %cst_16 = arith.constant dense<0.000000e+00> : vector<32x16xf32>
    %24 = tpu.matmul %23, %12, %cst_16 {dimension_numbers = #tpu.dot_dimension_numbers<[1], [0], [0], [1], [0, 0, 1, 1], [], []>} : vector<32x32xf32>, vector<32x16xf32>, vector<32x16xf32> -> vector<32x16xf32>
    %c0_17 = arith.constant 0 : index
    %c0_18 = arith.constant 0 : index
    %25 = vector.load %arg12[%c0_17, %c0_18] : memref<32x128xf32, #tpu.memory_space<vmem>>, vector<32x128xf32>
    %c0_19 = arith.constant 0 : index
    %c0_20 = arith.constant 0 : index
    %c0_21 = arith.constant 0 : index
    %26 = vector.load %arg8[%c0_19, %c0_20, %c0_21] : memref<1x16x128xf32, #tpu.memory_space<vmem>>, vector<1x16x128xf32>
    %27 = vector.shape_cast %26 : vector<1x16x128xf32> to vector<16x128xf32>
    %cst_22 = arith.constant dense<0.000000e+00> : vector<32x128xf32>
    %28 = tpu.matmul %24, %27, %cst_22 {dimension_numbers = #tpu.dot_dimension_numbers<[1], [0], [0], [1], [0, 0, 1, 1], [], []>} : vector<32x16xf32>, vector<16x128xf32>, vector<32x128xf32> -> vector<32x128xf32>
    %29 = arith.addf %25, %28 : vector<32x128xf32>
    %c0_23 = arith.constant 0 : index
    %c0_24 = arith.constant 0 : index
    %30 = vector.load %arg12[%c0_23, %c0_24] : memref<32x128xf32, #tpu.memory_space<vmem>>, vector<32x128xf32>
    tpu.vector_store %arg12[%c0_23, %c0_24], %29 {strides = array<i32>} : memref<32x128xf32, #tpu.memory_space<vmem>>, vector<32x128xf32>,
    %c7_i32 = arith.constant 7 : i32
    %31 = arith.cmpi eq, %arg1, %c7_i32 : i32
    %32 = arith.extui %31 : i1 to i32
    %c0_i32_25 = arith.constant 0 : i32
    %33 = arith.cmpi ne, %32, %c0_i32_25 : i32
    scf.if %33 {
      %c0_26 = arith.constant 0 : index
      %c0_27 = arith.constant 0 : index
      %c0_28 = arith.constant 0 : index
      %34 = vector.load %arg2[%c0_26, %c0_27, %c0_28] : memref<1x32x128xf32, #tpu.memory_space<vmem>>, vector<1x32x128xf32>
      %35 = vector.shape_cast %34 : vector<1x32x128xf32> to vector<32x128xf32>
      %c0_29 = arith.constant 0 : index
      %c0_30 = arith.constant 0 : index
      %36 = vector.load %arg12[%c0_29, %c0_30] : memref<32x128xf32, #tpu.memory_space<vmem>>, vector<32x128xf32>
      %37 = arith.addf %35, %36 : vector<32x128xf32>
      %c0_31 = arith.constant 0 : index
      %c0_32 = arith.constant 0 : index
      %38 = vector.load %arg9[%c0_31, %c0_32] : memref<1x128xf32, #tpu.memory_space<vmem>>, vector<1x128xf32>
      %39 = vector.broadcast %38 : vector<1x128xf32> to vector<32x128xf32>
      %40 = arith.addf %37, %39 : vector<32x128xf32>
      %c0_33 = arith.constant 0 : index
      %c0_34 = arith.constant 0 : index
      %c0_35 = arith.constant 0 : index
      %41 = vector.load %arg10[%c0_33, %c0_34, %c0_35] : memref<1x32x128xf32, #tpu.memory_space<vmem>>, vector<1x32x128xf32>
      %42 = vector.shape_cast %41 : vector<1x32x128xf32> to vector<32x128xf32>
      %43 = vector.shape_cast %40 : vector<32x128xf32> to vector<1x32x128xf32>
      tpu.vector_store %arg10[%c0_33, %c0_34, %c0_35], %43 {strides = array<i32>} : memref<1x32x128xf32, #tpu.memory_space<vmem>>, vector<1x32x128xf32>,
    } else {
    }
    return
  }
  func.func @transform_0(%arg0: i32, %arg1: i32) -> (i32, i32, i32) {
    %c0_i32 = arith.constant 0 : i32
    %c0_i32_0 = arith.constant 0 : i32
    %c0_i32_1 = arith.constant 0 : i32
    return %arg0, %c0_i32, %c0_i32_0 : i32, i32, i32
  }
  func.func @transform_1(%arg0: i32, %arg1: i32) -> (i32, i32) {
    %c0_i32 = arith.constant 0 : i32
    %c0_i32_0 = arith.constant 0 : i32
    %c0_i32_1 = arith.constant 0 : i32
    return %c0_i32, %c0_i32_0 : i32, i32
  }
  func.func @transform_2(%arg0: i32, %arg1: i32) -> (i32, i32) {
    %c0_i32 = arith.constant 0 : i32
    %c0_i32_0 = arith.constant 0 : i32
    %c0_i32_1 = arith.constant 0 : i32
    return %c0_i32, %c0_i32_0 : i32, i32
  }
  func.func @transform_3(%arg0: i32, %arg1: i32) -> (i32, i32, i32) {
    %c0_i32 = arith.constant 0 : i32
    %c0_i32_0 = arith.constant 0 : i32
    %c0_i32_1 = arith.constant 0 : i32
    return %arg1, %c0_i32, %c0_i32_0 : i32, i32, i32
  }
  func.func @transform_4(%arg0: i32, %arg1: i32) -> (i32, i32, i32) {
    %c0_i32 = arith.constant 0 : i32
    %c0_i32_0 = arith.constant 0 : i32
    %c0_i32_1 = arith.constant 0 : i32
    return %arg1, %c0_i32, %c0_i32_0 : i32, i32, i32
  }
  func.func @transform_5(%arg0: i32, %arg1: i32) -> (i32, i32, i32) {
    %c0_i32 = arith.constant 0 : i32
    %c0_i32_0 = arith.constant 0 : i32
    %c0_i32_1 = arith.constant 0 : i32
    return %arg1, %c0_i32, %c0_i32_0 : i32, i32, i32
  }
  func.func @transform_6(%arg0: i32, %arg1: i32) -> (i32, i32, i32) {
    %c0_i32 = arith.constant 0 : i32
    %c0_i32_0 = arith.constant 0 : i32
    %c0_i32_1 = arith.constant 0 : i32
    return %arg1, %c0_i32, %c0_i32_0 : i32, i32, i32
  }
  func.func @transform_7(%arg0: i32, %arg1: i32) -> (i32, i32) {
    %c0_i32 = arith.constant 0 : i32
    %c0_i32_0 = arith.constant 0 : i32
    %c0_i32_1 = arith.constant 0 : i32
    return %c0_i32, %c0_i32_0 : i32, i32
  }
  func.func @transform_8(%arg0: i32, %arg1: i32) -> (i32, i32, i32) {
    %c0_i32 = arith.constant 0 : i32
    %c0_i32_0 = arith.constant 0 : i32
    %c0_i32_1 = arith.constant 0 : i32
    return %arg0, %c0_i32, %c0_i32_0 : i32, i32, i32
  }
}

module attributes {stable_mosaic.version = 11 : i64} {
  func.func @_attn_block_kernel(%arg0: i32, %arg1: i32, %arg2: memref<1x32x128xf32, #tpu.memory_space<vmem>>, %arg3: memref<1x128xf32, #tpu.memory_space<vmem>>, %arg4: memref<1x128xf32, #tpu.memory_space<vmem>>, %arg5: memref<1x128x16xf32, #tpu.memory_space<vmem>>, %arg6: memref<1x128x16xf32, #tpu.memory_space<vmem>>, %arg7: memref<1x128x16xf32, #tpu.memory_space<vmem>>, %arg8: memref<1x16x128xf32, #tpu.memory_space<vmem>>, %arg9: memref<1x128xf32, #tpu.memory_space<vmem>>, %arg10: memref<1x32x128xf32, #tpu.memory_space<vmem>>, %arg11: memref<32x128xf32, #tpu.memory_space<vmem>>, %arg12: memref<32x128xf32, #tpu.memory_space<vmem>>) attributes {dimension_semantics = [#tpu.dimension_semantics<parallel>, #tpu.dimension_semantics<arbitrary>], iteration_bounds = array<i64: 2, 8>, scalar_prefetch = 0 : i64, scratch_operands = 2 : i64, tpu.core_type = #tpu.core_type<tc>, window_params = [{transform_indices = @transform_0, window_bounds = array<i64: 1, 32, 128>}, {pipeline_mode = #tpu.pipeline_mode<synchronous>, transform_indices = @transform_1, window_bounds = array<i64: 1, 128>}, {pipeline_mode = #tpu.pipeline_mode<synchronous>, transform_indices = @transform_2, window_bounds = array<i64: 1, 128>}, {transform_indices = @transform_3, window_bounds = array<i64: 1, 128, 16>}, {transform_indices = @transform_4, window_bounds = array<i64: 1, 128, 16>}, {transform_indices = @transform_5, window_bounds = array<i64: 1, 128, 16>}, {transform_indices = @transform_6, window_bounds = array<i64: 1, 16, 128>}, {pipeline_mode = #tpu.pipeline_mode<synchronous>, transform_indices = @transform_7, window_bounds = array<i64: 1, 128>}, {transform_indices = @transform_8, window_bounds = array<i64: 1, 32, 128>}]} {
    %c0_i32 = arith.constant 0 : i32
    %0 = arith.cmpi eq, %arg1, %c0_i32 : i32
    %1 = arith.extui %0 : i1 to i32
    %c0_i32_0 = arith.constant 0 : i32
    %2 = arith.cmpi ne, %1, %c0_i32_0 : i32
    scf.if %2 {
      %c0_26 = arith.constant 0 : index
      %c0_27 = arith.constant 0 : index
      %c0_28 = arith.constant 0 : index
      %34 = vector.load %arg2[%c0_26, %c0_27, %c0_28] : memref<1x32x128xf32, #tpu.memory_space<vmem>>, vector<1x32x128xf32>
      %35 = vector.shape_cast %34 : vector<1x32x128xf32> to vector<32x128xf32>
      %cst_29 = arith.constant dense<0.000000e+00> : vector<32xf32>
      %36 = vector.multi_reduction <add>, %35, %cst_29 [1] : vector<32x128xf32> to vector<32xf32>
      %37 = vector.shape_cast %36 : vector<32xf32> to vector<32x1xf32>
      %cst_30 = arith.constant 1.280000e+02 : f32
      %38 = vector.broadcast %cst_30 : f32 to vector<32x1xf32>
      %39 = arith.divf %37, %38 : vector<32x1xf32>
      %40 = vector.broadcast %39 : vector<32x1xf32> to vector<32x128xf32>
      %41 = arith.subf %35, %40 : vector<32x128xf32>
      %42 = arith.mulf %41, %41 : vector<32x128xf32>
      %cst_31 = arith.constant dense<0.000000e+00> : vector<32xf32>
      %43 = vector.multi_reduction <add>, %42, %cst_31 [1] : vector<32x128xf32> to vector<32xf32>
      %44 = vector.shape_cast %43 : vector<32xf32> to vector<32x1xf32>
      %cst_32 = arith.constant 1.280000e+02 : f32
      %45 = vector.broadcast %cst_32 : f32 to vector<32x1xf32>
      %46 = arith.divf %44, %45 : vector<32x1xf32>
      %47 = vector.broadcast %39 : vector<32x1xf32> to vector<32x128xf32>
      %48 = arith.subf %35, %47 : vector<32x128xf32>
      %cst_33 = arith.constant 9.99999974E-6 : f32
      %49 = vector.broadcast %cst_33 : f32 to vector<32x1xf32>
      %50 = arith.addf %46, %49 : vector<32x1xf32>
      %51 = math.rsqrt %50 : vector<32x1xf32>
      %52 = vector.broadcast %51 : vector<32x1xf32> to vector<32x128xf32>
      %53 = arith.mulf %48, %52 : vector<32x128xf32>
      %c0_34 = arith.constant 0 : index
      %c0_35 = arith.constant 0 : index
      %54 = vector.load %arg3[%c0_34, %c0_35] : memref<1x128xf32, #tpu.memory_space<vmem>>, vector<1x128xf32>
      %55 = vector.broadcast %54 : vector<1x128xf32> to vector<32x128xf32>
      %56 = arith.mulf %53, %55 : vector<32x128xf32>
      %c0_36 = arith.constant 0 : index
      %c0_37 = arith.constant 0 : index
      %57 = vector.load %arg4[%c0_36, %c0_37] : memref<1x128xf32, #tpu.memory_space<vmem>>, vector<1x128xf32>
      %58 = vector.broadcast %57 : vector<1x128xf32> to vector<32x128xf32>
      %59 = arith.addf %56, %58 : vector<32x128xf32>
      %c0_38 = arith.constant 0 : index
      %c0_39 = arith.constant 0 : index
      %60 = vector.load %arg11[%c0_38, %c0_39] : memref<32x128xf32, #tpu.memory_space<vmem>>, vector<32x128xf32>
      tpu.vector_store %arg11[%c0_38, %c0_39], %59 {strides = array<i32>} : memref<32x128xf32, #tpu.memory_space<vmem>>, vector<32x128xf32>,
      %cst_40 = arith.constant 0.000000e+00 : f32
      %61 = vector.broadcast %cst_40 : f32 to vector<32x128xf32>
      %c0_41 = arith.constant 0 : index
      %c0_42 = arith.constant 0 : index
      %62 = vector.load %arg12[%c0_41, %c0_42] : memref<32x128xf32, #tpu.memory_space<vmem>>, vector<32x128xf32>
      tpu.vector_store %arg12[%c0_41, %c0_42], %61 {strides = array<i32>} : memref<32x128xf32, #tpu.memory_space<vmem>>, vector<32x128xf32>,
    } else {
    }
    %c0 = arith.constant 0 : index
    %c0_1 = arith.constant 0 : index
    %3 = vector.load %arg11[%c0, %c0_1] : memref<32x128xf32, #tpu.memory_space<vmem>>, vector<32x128xf32>
    %c0_2 = arith.constant 0 : index
    %c0_3 = arith.constant 0 : index
    %c0_4 = arith.constant 0 : index
    %4 = vector.load %arg5[%c0_2, %c0_3, %c0_4] : memref<1x128x16xf32, #tpu.memory_space<vmem>>, vector<1x128x16xf32>
    %5 = vector.shape_cast %4 : vector<1x128x16xf32> to vector<128x16xf32>
    %cst = arith.constant dense<0.000000e+00> : vector<32x16xf32>
    %6 = tpu.matmul %3, %5, %cst {dimension_numbers = #tpu.dot_dimension_numbers<[1], [0], [0], [1], [0, 0, 1, 1], [], []>} : vector<32x128xf32>, vector<128x16xf32>, vector<32x16xf32> -> vector<32x16xf32>
    %c0_5 = arith.constant 0 : index
    %c0_6 = arith.constant 0 : index
    %c0_7 = arith.constant 0 : index
    %7 = vector.load %arg6[%c0_5, %c0_6, %c0_7] : memref<1x128x16xf32, #tpu.memory_space<vmem>>, vector<1x128x16xf32>
    %8 = vector.shape_cast %7 : vector<1x128x16xf32> to vector<128x16xf32>
    %cst_8 = arith.constant dense<0.000000e+00> : vector<32x16xf32>
    %9 = tpu.matmul %3, %8, %cst_8 {dimension_numbers = #tpu.dot_dimension_numbers<[1], [0], [0], [1], [0, 0, 1, 1], [], []>} : vector<32x128xf32>, vector<128x16xf32>, vector<32x16xf32> -> vector<32x16xf32>
    %c0_9 = arith.constant 0 : index
    %c0_10 = arith.constant 0 : index
    %c0_11 = arith.constant 0 : index
    %10 = vector.load %arg7[%c0_9, %c0_10, %c0_11] : memref<1x128x16xf32, #tpu.memory_space<vmem>>, vector<1x128x16xf32>
    %11 = vector.shape_cast %10 : vector<1x128x16xf32> to vector<128x16xf32>
    %cst_12 = arith.constant dense<0.000000e+00> : vector<32x16xf32>
    %12 = tpu.matmul %3, %11, %cst_12 {dimension_numbers = #tpu.dot_dimension_numbers<[1], [0], [0], [1], [0, 0, 1, 1], [], []>} : vector<32x128xf32>, vector<128x16xf32>, vector<32x16xf32> -> vector<32x16xf32>
    %cst_13 = arith.constant dense<0.000000e+00> : vector<32x32xf32>
    %13 = tpu.matmul %6, %9, %cst_13 {dimension_numbers = #tpu.dot_dimension_numbers<[1], [1], [0], [0], [0, 0, 1, 0], [], []>} : vector<32x16xf32>, vector<32x16xf32>, vector<32x32xf32> -> vector<32x32xf32>
    %cst_14 = arith.constant dense<0xFF800000> : vector<32xf32>
    %14 = vector.multi_reduction <maximumf>, %13, %cst_14 [1] : vector<32x32xf32> to vector<32xf32>
    %15 = vector.shape_cast %14 : vector<32xf32> to vector<32x1xf32>
    %16 = vector.broadcast %15 : vector<32x1xf32> to vector<32x32xf32>
    %17 = arith.subf %13, %16 : vector<32x32xf32>
    %18 = math.exp %17 : vector<32x32xf32>
    %cst_15 = arith.constant dense<0.000000e+00> : vector<32xf32>
    %19 = vector.multi_reduction <add>, %18, %cst_15 [1] : vector<32x32xf32> to vector<32xf32>
    %20 = vector.shape_cast %19 : vector<32xf32> to vector<32x1xf32>
    %21 = tpu.reciprocal %20 {approx = true} : vector<32x1xf32> -> vector<32x1xf32>
    %22 = vector.broadcast %21 : vector<32x1xf32> to vector<32x32xf32>
    %23 = arith.mulf %18, %22 : vector<32x32xf32>
    %cst_16 = arith.constant dense<0.000000e+00> : vector<32x16xf32>
    %24 = tpu.matmul %23, %12, %cst_16 {dimension_numbers = #tpu.dot_dimension_numbers<[1], [0], [0], [1], [0, 0, 1, 1], [], []>} : vector<32x32xf32>, vector<32x16xf32>, vector<32x16xf32> -> vector<32x16xf32>
    %c0_17 = arith.constant 0 : index
    %c0_18 = arith.constant 0 : index
    %25 = vector.load %arg12[%c0_17, %c0_18] : memref<32x128xf32, #tpu.memory_space<vmem>>, vector<32x128xf32>
    %c0_19 = arith.constant 0 : index
    %c0_20 = arith.constant 0 : index
    %c0_21 = arith.constant 0 : index
    %26 = vector.load %arg8[%c0_19, %c0_20, %c0_21] : memref<1x16x128xf32, #tpu.memory_space<vmem>>, vector<1x16x128xf32>
    %27 = vector.shape_cast %26 : vector<1x16x128xf32> to vector<16x128xf32>
    %cst_22 = arith.constant dense<0.000000e+00> : vector<32x128xf32>
    %28 = tpu.matmul %24, %27, %cst_22 {dimension_numbers = #tpu.dot_dimension_numbers<[1], [0], [0], [1], [0, 0, 1, 1], [], []>} : vector<32x16xf32>, vector<16x128xf32>, vector<32x128xf32> -> vector<32x128xf32>
    %29 = arith.addf %25, %28 : vector<32x128xf32>
    %c0_23 = arith.constant 0 : index
    %c0_24 = arith.constant 0 : index
    %30 = vector.load %arg12[%c0_23, %c0_24] : memref<32x128xf32, #tpu.memory_space<vmem>>, vector<32x128xf32>
    tpu.vector_store %arg12[%c0_23, %c0_24], %29 {strides = array<i32>} : memref<32x128xf32, #tpu.memory_space<vmem>>, vector<32x128xf32>,
    %c7_i32 = arith.constant 7 : i32
    %31 = arith.cmpi eq, %arg1, %c7_i32 : i32
    %32 = arith.extui %31 : i1 to i32
    %c0_i32_25 = arith.constant 0 : i32
    %33 = arith.cmpi ne, %32, %c0_i32_25 : i32
    scf.if %33 {
      %c0_26 = arith.constant 0 : index
      %c0_27 = arith.constant 0 : index
      %c0_28 = arith.constant 0 : index
      %34 = vector.load %arg2[%c0_26, %c0_27, %c0_28] : memref<1x32x128xf32, #tpu.memory_space<vmem>>, vector<1x32x128xf32>
      %35 = vector.shape_cast %34 : vector<1x32x128xf32> to vector<32x128xf32>
      %c0_29 = arith.constant 0 : index
      %c0_30 = arith.constant 0 : index
      %36 = vector.load %arg12[%c0_29, %c0_30] : memref<32x128xf32, #tpu.memory_space<vmem>>, vector<32x128xf32>
      %37 = arith.addf %35, %36 : vector<32x128xf32>
      %c0_31 = arith.constant 0 : index
      %c0_32 = arith.constant 0 : index
      %38 = vector.load %arg9[%c0_31, %c0_32] : memref<1x128xf32, #tpu.memory_space<vmem>>, vector<1x128xf32>
      %39 = vector.broadcast %38 : vector<1x128xf32> to vector<32x128xf32>
      %40 = arith.addf %37, %39 : vector<32x128xf32>
      %c0_33 = arith.constant 0 : index
      %c0_34 = arith.constant 0 : index
      %c0_35 = arith.constant 0 : index
      %41 = vector.load %arg10[%c0_33, %c0_34, %c0_35] : memref<1x32x128xf32, #tpu.memory_space<vmem>>, vector<1x32x128xf32>
      %42 = vector.shape_cast %41 : vector<1x32x128xf32> to vector<32x128xf32>
      %43 = vector.shape_cast %40 : vector<32x128xf32> to vector<1x32x128xf32>
      tpu.vector_store %arg10[%c0_33, %c0_34, %c0_35], %43 {strides = array<i32>} : memref<1x32x128xf32, #tpu.memory_space<vmem>>, vector<1x32x128xf32>,
    } else {
    }
    return
  }
  func.func @transform_0(%arg0: i32, %arg1: i32) -> (i32, i32, i32) {
    %c0_i32 = arith.constant 0 : i32
    %c0_i32_0 = arith.constant 0 : i32
    %c0_i32_1 = arith.constant 0 : i32
    return %arg0, %c0_i32, %c0_i32_0 : i32, i32, i32
  }
  func.func @transform_1(%arg0: i32, %arg1: i32) -> (i32, i32) {
    %c0_i32 = arith.constant 0 : i32
    %c0_i32_0 = arith.constant 0 : i32
    %c0_i32_1 = arith.constant 0 : i32
    return %c0_i32, %c0_i32_0 : i32, i32
  }
  func.func @transform_2(%arg0: i32, %arg1: i32) -> (i32, i32) {
    %c0_i32 = arith.constant 0 : i32
    %c0_i32_0 = arith.constant 0 : i32
    %c0_i32_1 = arith.constant 0 : i32
    return %c0_i32, %c0_i32_0 : i32, i32
  }
  func.func @transform_3(%arg0: i32, %arg1: i32) -> (i32, i32, i32) {
    %c0_i32 = arith.constant 0 : i32
    %c0_i32_0 = arith.constant 0 : i32
    %c0_i32_1 = arith.constant 0 : i32
    return %arg1, %c0_i32, %c0_i32_0 : i32, i32, i32
  }
  func.func @transform_4(%arg0: i32, %arg1: i32) -> (i32, i32, i32) {
    %c0_i32 = arith.constant 0 : i32
    %c0_i32_0 = arith.constant 0 : i32
    %c0_i32_1 = arith.constant 0 : i32
    return %arg1, %c0_i32, %c0_i32_0 : i32, i32, i32
  }
  func.func @transform_5(%arg0: i32, %arg1: i32) -> (i32, i32, i32) {
    %c0_i32 = arith.constant 0 : i32
    %c0_i32_0 = arith.constant 0 : i32
    %c0_i32_1 = arith.constant 0 : i32
    return %arg1, %c0_i32, %c0_i32_0 : i32, i32, i32
  }
  func.func @transform_6(%arg0: i32, %arg1: i32) -> (i32, i32, i32) {
    %c0_i32 = arith.constant 0 : i32
    %c0_i32_0 = arith.constant 0 : i32
    %c0_i32_1 = arith.constant 0 : i32
    return %arg1, %c0_i32, %c0_i32_0 : i32, i32, i32
  }
  func.func @transform_7(%arg0: i32, %arg1: i32) -> (i32, i32) {
    %c0_i32 = arith.constant 0 : i32
    %c0_i32_0 = arith.constant 0 : i32
    %c0_i32_1 = arith.constant 0 : i32
    return %c0_i32, %c0_i32_0 : i32, i32
  }
  func.func @transform_8(%arg0: i32, %arg1: i32) -> (i32, i32, i32) {
    %c0_i32 = arith.constant 0 : i32
    %c0_i32_0 = arith.constant 0 : i32
    %c0_i32_1 = arith.constant 0 : i32
    return %arg0, %c0_i32, %c0_i32_0 : i32, i32, i32
  }
}

</mosaic_0001>

<bundles_post_ra>
// kernel: tpu_custom_call.1
= control target key start
LH: loop header
LB: loop body
LE: loop exit
PB: predicated region body
PF: predicated region fallthrough
CT: control target
= control target key end

     0   :  { %s1592_s0 = inlined_call_operand.vmem [shape: f32[2,32,128], index: 0, kind: input, shape index: {}]   ;;  %s1593_s1 = inlined_call_operand.vmem [shape: f32[1,128], index: 1, kind: input, shape index: {}]   ;;  %s1594_s2 = inlined_call_operand.vmem [shape: f32[1,128], index: 2, kind: input, shape index: {}]   ;;  %s1595_s3 = inlined_call_operand.vmem [shape: f32[8,128,16], index: 3, kind: input, shape index: {}]   ;;  %s1596_s4 = inlined_call_operand.vmem [shape: f32[8,128,16], index: 4, kind: input, shape index: {}]   ;;  %s1597_s5 = inlined_call_operand.vmem [shape: f32[8,128,16], index: 5, kind: input, shape index: {}]   ;;  %s1598_s6 = inlined_call_operand.vmem [shape: f32[8,16,128], index: 6, kind: input, shape index: {}]   ;;  %s1599_s7 = inlined_call_operand.vmem [shape: f32[1,128], index: 7, kind: input, shape index: {}]   ;;  %s1600_s8 = inlined_call_operand.hbm [shape: f32[2,32,128], index: 8, kind: output, shape index: {}]  }
   0x1   :  { %1608 = sst [smem:[#allocation15_spill]] %s1592_s0 }
   0x2   :  { %13 = vsyncpa [#allocation5], 0 }
   0x3   :  { %15 = vsyncpa [#allocation5 + $0x1], 0  ;;  %s1312_s27 = smov 0   ;;  %s1314_s28 = smov 0  }
   0x4   :  { %s1316_s29 = smov 0   ;;  %s1318_s30 = smov 0  }
   0x5   :  { %s1320_s9 = smov 0   ;;  %s1322_s10 = smov 0  }
   0x6   :  { %s1324_s11 = smov 0   ;;  %s1326_s12 = smov 0  }
   0x7 LB: > { %1609 = sst [smem:[#allocation7_spill]] %s1233_s27  ;;  %s1014_s13 = sadd.s32 4294967295, %s1261_s12   ;;  %s1261_s12 = sphi %s1326_s12, %s21_s12   ;;  %s1257_s11 = sphi %s1324_s11, %s1628_s11   ;;  %s1253_s10 = sphi %s1322_s10, %s1627_s10   ;;  %s1249_s9 = sphi %s1320_s9, %s1626_s9   ;;  %s1245_s30 = sphi %s1318_s30, %s1625_s30   ;;  %s1241_s29 = sphi %s1316_s29, %s1624_s29   ;;  %s1237_s28 = sphi %s1314_s28, %s1630_s28   ;;  %s1233_s27 = sphi %s1312_s27, %s1629_s27  }
   0x8   : > { %1610 = sst [smem:[#allocation8_spill]] %s1241_s29  ;;  %s1015_s14 = sadd.s32 4294967294, %s1261_s12  }
   0x9   : > { %1611 = sst [smem:[#allocation9_spill]] %s1253_s10  ;;  %s30_s15 = sadd.s32 1, %s1253_s10 }
   0xa   : > { %1612 = sst [smem:[#allocation10_spill]] %s1257_s11  ;;  %p31_p0 = scmp.ge.s32.totalorder %s30_s15, 8 }
   0xb   : > { %s33_s16 = sadd.s32 1, %s1257_s11  ;;  %p243_p1 = scmp.ne.s32.totalorder %s1241_s29, %s1237_s28 }
   0xc   : > { %p244_p2 = scmp.eq.s32.totalorder %s1014_s13, 15  ;;  %s1632_s15 = smov (%p31_p0, %s30_s15), 0 }
   0xd   : > { %1613 = sst [smem:[#allocation11_spill]] %s1632_s15  ;;  %s1634_s16 = smov (!%p31_p0, %s33_s16), %s1257_s11 }
   0xe   : > { %p1361_p3 = por %p244_p2, %p243_p1  ;;  %p249_p4 = scmp.ne.s32.totalorder %s1237_s28, %s1233_s27 }
   0xf   : > { %p35_p5 = scmp.ge.s32.totalorder %s1634_s16, 2  ;;  %p250_p6 = scmp.eq.s32.totalorder %s1015_s14, 15 }
  0x10   : > { %p1018_p7 = scmp.ge.s32.totalorder %s1261_s12, 1  ;;  %p317_p8 = scmp.lt.s32.totalorder %s1261_s12, 17 }
  0x11   : > { %s1636_s16 = smov (%p35_p5, %s1634_s16), 0  ;;  %p1371_p9 = por %p250_p6, %p249_p4 }
  0x12   : > { %1615 = sst [smem:[#allocation12_spill]] %s1636_s16  ;;  %p318_p10 = pnand %p1018_p7, %p317_p8 }
  0x13   : > { %s1616_s18 = scalar_select %p1371_p9, 1, 0 }
  0x14   : > { %s230_s19 = ssub.s32 %s1257_s11, %s1636_s16  ;;  %s233_s20 = sadd.s32 1, %s1241_s29 }
  0x15   : > { %1617 = sst [smem:[#allocation13_spill]] %s1616_s18  ;;  %p231_p11 = scmp.eq.s32.totalorder %s230_s19, 0 }
  0x16   : > { %321 = sbr.rel (%p318_p10) target bundleno = 1213 (0x4bd), region = 52  ;;  %s1605_s22 = sand.u32 (!%p318_p10), 1, %s1237_s28  }
  0x17   : > { %s1379_s21 = scalar_select %p231_p11, %s1241_s29, %s233_s20  }
  0x18   : > { %p371_p12 = scmp.lt.s32.totalorder (!%p318_p10), %s1249_s9, 1  ;;  %s1019_s23 = sshll.u32 (!%p318_p10), %s1605_s22, 5 }
  0x19   : > { %1618 = sst [smem:[#allocation14_spill]] %s1379_s21  ;;  %p376_p13 = scmp.lt.s32.totalorder (!%p318_p10), %s1245_s30, 7 }
  0x1a   : > { %s1619_s0 = sld [smem:[#allocation15_spill]] (!%p318_p10)  ;;  %p1030_p0 = scmp.ne.s32.totalorder (!%p318_p10), %s1245_s30, 0 }
  0x1b   : > { %s372_s24 = scalar_select %p371_p12, %s1249_s9, 1 }
  0x1c   : > { %s377_s25 = scalar_select %p376_p13, %s1245_s30, 7 }
  0x1d   : > { %s1053_s26 = sshll.u32 %s372_s24, 5  ;;  %399 = sbr.rel (%p1030_p0) target bundleno = 311 (0x137), region = 56 }
  0x1e   : > { %s1054_s20 = sshll.u32 %s377_s25, 7  ;;  %s1057_s27 = sshll.u32 %s377_s25, 4 }
  0x1f   : > { %s1396_s11 = scalar_lea.vmem %s1595_s3, %s1054_s20  ;;  %s1401_s29 = scalar_lea.vmem %s1596_s4, %s1054_s20 }
  0x20   : > { %s1391_s19 = scalar_lea.vmem %s1619_s0, %s1053_s26  ;;  %s1406_s24 = scalar_lea.vmem %s1597_s5, %s1054_s20 }
  0x21   : > { %s1411_s14 = scalar_lea.vmem %s1598_s6, %s1057_s27  ;;  %s1413_s0 = scalar_lea.vmem [#allocation4], %s1019_s23 }
  0x22   : > { %v402_v0 = vld [vmem:[%s1391_s19 + $0x10] sm:$0xff]  ;;  %v400_v1 = vld [vmem:[%s1391_s19] sm:$0xff]  ;;  %v403_v2 = vld [vmem:[%s1391_s19 + $0x18] sm:$0xff]  ;;  %v1263_v4 = vmov 128.0   ;;  %v1264_v33 = vmov 0.0  }
  0x23   : > { %408 = vadd.xlane.f32.xlu1 %v402_v0  ;;  %404 = vadd.xlane.f32.xlu0 %v400_v1  ;;  %v401_v3 = vld [vmem:[%s1391_s19 + $0x8] sm:$0xff]  ;;  %1140 = vrcp.f32 %v1263_v4  ;;  %511 = vst [vmem:[#allocation3] sm:$0xff] %v1264_v33  ;;  %v1138_v54 = vld [vmem:[%s1593_s1] ss:$0 sm:$0xff] }
  0x24   : > { %512 = vst [vmem:[#allocation3 + $0x18] sm:$0xff] %v1264_v33  ;;  %v1139_v59 = vld [vmem:[%s1594_s2] ss:$0 sm:$0xff] }
  0x25   : > { %513 = vst [vmem:[#allocation3 + $0x8] sm:$0xff] %v1264_v33 }
  0x26   : > { %514 = vst [vmem:[#allocation3 + $0x10] sm:$0xff] %v1264_v33 }
  0x29   : > { %v1141_v5 = vpop.eup %1140 }
  0x2a   : > { %v413_v6 = vmul.f32 128.0, %v1141_v5  ;;  %vm417_vm0 = vweird.f32 %v1141_v5 }
  0x2b   : > { %410 = vadd.xlane.f32.xlu1 %v403_v2  ;;  %406 = vadd.xlane.f32.xlu0 %v401_v3 }
  0x2c   : > { %v414_v7 = vsub.f32 1.0, %v413_v6 }
  0x2e   : > { %v415_v8 = vmul.f32 %v1141_v5, %v414_v7 }
  0x30   : > { %v416_v9 = vadd.f32 %v1141_v5, %v415_v8 }
  0x32   : > { %v418_v10 = vsel %vm417_vm0, %v1141_v5, %v416_v9 }
  0x96   : > { %v409_v11 = vpop.xlane.xlu1 %408  ;;  %v405_v12 = vpop.xlane.xlu0 %404 }
  0x97   : > { %v421_v13 = vmul.f32 %v418_v10, %v409_v11  ;;  %v419_v14 = vmul.f32 %v418_v10, %v405_v12 }
  0x99   : > { %v1420_v15 = vsub.f32 %v402_v0, %v421_v13  ;;  %v423_v16 = vsub.f32 %v400_v1, %v419_v14 }
  0x9b   : > { %v429_v17 = vmul.f32 %v1420_v15, %v1420_v15  ;;  %v427_v18 = vmul.f32 %v423_v16, %v423_v16 }
  0x9d   : > { %435 = vadd.xlane.f32.xlu0 %v429_v17  ;;  %431 = vadd.xlane.f32.xlu2 %v427_v18 }
  0x9e   : > { %v411_v19 = vpop.xlane.xlu1 %410  ;;  %v407_v20 = vpop.xlane.xlu0 %406 }
  0x9f   : > { %v422_v21 = vmul.f32 %v418_v10, %v411_v19  ;;  %v420_v22 = vmul.f32 %v418_v10, %v407_v20 }
  0xa1   : > { %v1424_v23 = vsub.f32 %v403_v2, %v422_v21  ;;  %v1426_v24 = vsub.f32 %v401_v3, %v420_v22 }
  0xa3   : > { %v430_v25 = vmul.f32 %v1424_v23, %v1424_v23  ;;  %v428_v26 = vmul.f32 %v1426_v24, %v1426_v24 }
  0xa5   : > { %437 = vadd.xlane.f32.xlu1 %v430_v25  ;;  %433 = vadd.xlane.f32.xlu2 %v428_v26 }
 0x110   : > { %v432_v27 = vpop.xlane.xlu2 %431  ;;  %v436_v28 = vpop.xlane.xlu0 %435 }
 0x111   : > { %v439_v29 = vmul.f32 %v432_v27, %v418_v10  ;;  %v441_v30 = vmul.f32 %v436_v28, %v418_v10 }
 0x113   : > { %v443_v31 = vadd.f32 1e-05, %v439_v29  ;;  %v445_v32 = vadd.f32 1e-05, %v441_v30 }
 0x115   : > { %1142 = vrsqrt.f32 %v443_v31  ;;  %vm453_vm3 = vweird.f32 %v443_v31  ;;  %vm473_vm5 = vweird.f32 %v445_v32 }
 0x116   : > { %1144 = vrsqrt.f32 %v445_v32 }
 0x118   : > { %v438_v34 = vpop.xlane.xlu1 %437  ;;  %v434_v35 = vpop.xlane.xlu2 %433 }
 0x119   : > { %v442_v36 = vmul.f32 %v438_v34, %v418_v10  ;;  %v440_v37 = vmul.f32 %v434_v35, %v418_v10 }
 0x11b   : > { %v1143_v38 = vpop.eup %1142  ;;  %v446_v39 = vadd.f32 1e-05, %v442_v36  ;;  %v444_v40 = vadd.f32 1e-05, %v440_v37 }
 0x11c   : > { %v1145_v41 = vpop.eup %1144  ;;  %v448_v42 = vmul.f32 %v1143_v38, %v443_v31  ;;  %vm454_vm1 = vweird.f32 %v1143_v38 }
 0x11d   : > { %v468_v43 = vmul.f32 %v1145_v41, %v445_v32  ;;  %1146 = vrsqrt.f32 %v446_v39  ;;  %vm474_vm2 = vweird.f32 %v1145_v41  ;;  %vm455_vm4 = vmor %vm453_vm3, %vm454_vm1  ;;  %vm483_vm9 = vweird.f32 %v446_v39 }
 0x11e   : > { %v449_v44 = vmul.f32 %v1143_v38, %v448_v42  ;;  %1148 = vrsqrt.f32 %v444_v40  ;;  %vm475_vm6 = vmor %vm473_vm5, %vm474_vm2  ;;  %vm463_vm11 = vweird.f32 %v444_v40 }
 0x11f   : > { %v469_v45 = vmul.f32 %v1145_v41, %v468_v43 }
 0x120   : > { %v450_v46 = vmul.f32 0.5, %v449_v44 }
 0x121   : > { %v470_v47 = vmul.f32 0.5, %v469_v45 }
 0x122   : > { %v451_v48 = vsub.f32 1.5, %v450_v46 }
 0x123   : > { %v1147_v49 = vpop.eup %1146  ;;  %v471_v50 = vsub.f32 1.5, %v470_v47 }
 0x124   : > { %v1149_v51 = vpop.eup %1148  ;;  %v452_v52 = vmul.f32 %v1143_v38, %v451_v48  ;;  %v478_v53 = vmul.f32 %v1147_v49, %v446_v39  ;;  %vm484_vm7 = vweird.f32 %v1147_v49 }
 0x125   : > { %v472_v55 = vmul.f32 %v1145_v41, %v471_v50  ;;  %v458_v56 = vmul.f32 %v1149_v51, %v444_v40  ;;  %vm464_vm8 = vweird.f32 %v1149_v51  ;;  %vm485_vm10 = vmor %vm483_vm9, %vm484_vm7 }
 0x126   : > { %v456_v57 = vsel %vm455_vm4, %v1143_v38, %v452_v52  ;;  %v479_v58 = vmul.f32 %v1147_v49, %v478_v53  ;;  %vm465_vm12 = vmor %vm463_vm11, %vm464_vm8 }
 0x127   : > { %v487_v60 = vmul.f32 %v456_v57, %v423_v16  ;;  %v476_v61 = vsel %vm475_vm6, %v1145_v41, %v472_v55  ;;  %v459_v62 = vmul.f32 %v1149_v51, %v458_v56 }
 0x128   : > { %v489_v63 = vmul.f32 %v476_v61, %v1420_v15  ;;  %v480_v0 = vmul.f32 0.5, %v479_v58 }
 0x129   : > { %v495_v1 = vmul.f32 %v1138_v54, %v487_v60  ;;  %v460_v2 = vmul.f32 0.5, %v459_v62 }
 0x12a   : > { %v497_v3 = vmul.f32 %v1138_v54, %v489_v63  ;;  %v481_v4 = vsub.f32 1.5, %v480_v0 }
 0x12b   : > { %v503_v5 = vadd.f32 %v1139_v59, %v495_v1  ;;  %v461_v6 = vsub.f32 1.5, %v460_v2 }
 0x12c   : > { %v505_v7 = vadd.f32 %v1139_v59, %v497_v3  ;;  %v482_v8 = vmul.f32 %v1147_v49, %v481_v4 }
 0x12d   : > { %507 = vst [vmem:[#allocation2 + $0x10] sm:$0xff] %v503_v5  ;;  %v462_v9 = vmul.f32 %v1149_v51, %v461_v6 }
 0x12e   : > { %509 = vst [vmem:[#allocation2 + $0x18] sm:$0xff] %v505_v7  ;;  %v486_v10 = vsel %vm485_vm10, %v1147_v49, %v482_v8 }
 0x12f   : > { %v490_v11 = vmul.f32 %v486_v10, %v1424_v23  ;;  %v466_v12 = vsel %vm465_vm12, %v1149_v51, %v462_v9 }
 0x130   : > { %v488_v13 = vmul.f32 %v466_v12, %v1426_v24 }
 0x131   : > { %v498_v14 = vmul.f32 %v1138_v54, %v490_v11 }
 0x132   : > { %v496_v15 = vmul.f32 %v1138_v54, %v488_v13 }
 0x133   : > { %v506_v16 = vadd.f32 %v1139_v59, %v498_v14 }
 0x134   : > { %v504_v17 = vadd.f32 %v1139_v59, %v496_v15 }
 0x135   : > { %510 = vst [vmem:[#allocation2 + $0x8] sm:$0xff] %v506_v16 }
 0x136   : > { %508 = vst [vmem:[#allocation2] sm:$0xff] %v504_v17 }
 0x137 PF: > { %v579_v18 = vld [vmem:[%s1401_s29 + $0x78] sm:$0xff]  ;;  %v578_v19 = vld [vmem:[%s1401_s29 + $0x70] sm:$0xff]  ;;  %v577_v20 = vld [vmem:[%s1401_s29 + $0x68] sm:$0xff]  ;;  %vm654_vm13 = vcmask 130048   ;;  %vm708_vm14 = vcmask 261120   ;;  %p1047_p1 = scmp.ne.s32.totalorder %s1245_s30, 7 }
 0x138   : > { %580 = vmatpush.msra.mxu1 %v579_v18  ;;  %v576_v21 = vld [vmem:[%s1401_s29 + $0x60] sm:$0xff]  ;;  %v534_v22 = vld [vmem:[%s1396_s11 + $0x78] sm:$0xff]  ;;  %v574_v24 = vld [vmem:[%s1401_s29 + $0x50] sm:$0xff] }
 0x139   : > { %v575_v23 = vld [vmem:[%s1401_s29 + $0x58] sm:$0xff]  ;;  %535 = vmatpush.msra.mxu0 %v534_v22  ;;  %v533_v25 = vld [vmem:[%s1396_s11 + $0x70] sm:$0xff]  ;;  %v532_v26 = vld [vmem:[%s1396_s11 + $0x68] sm:$0xff] }
 0x13a   : > { %581 = vmatpush.msra.mxu1 %v578_v19  ;;  %v573_v27 = vld [vmem:[%s1401_s29 + $0x48] sm:$0xff]  ;;  %v531_v28 = vld [vmem:[%s1396_s11 + $0x60] sm:$0xff]  ;;  %v530_v30 = vld [vmem:[%s1396_s11 + $0x58] sm:$0xff] }
 0x13b   : > { %536 = vmatpush.msra.mxu0 %v533_v25  ;;  %v572_v29 = vld [vmem:[%s1401_s29 + $0x40] sm:$0xff]  ;;  %v571_v31 = vld [vmem:[%s1401_s29 + $0x38] sm:$0xff]  ;;  %v570_v32 = vld [vmem:[%s1401_s29 + $0x30] sm:$0xff] }
 0x13c   : > { %582 = vmatpush.msra.mxu1 %v577_v20  ;;  %v529_v33 = vld [vmem:[%s1396_s11 + $0x50] sm:$0xff]  ;;  %v528_v34 = vld [vmem:[%s1396_s11 + $0x48] sm:$0xff]  ;;  %v527_v36 = vld [vmem:[%s1396_s11 + $0x40] sm:$0xff] }
 0x13d   : > { %537 = vmatpush.msra.mxu0 %v532_v26  ;;  %v569_v35 = vld [vmem:[%s1401_s29 + $0x28] sm:$0xff]  ;;  %v568_v37 = vld [vmem:[%s1401_s29 + $0x20] sm:$0xff]  ;;  %v526_v38 = vld [vmem:[%s1396_s11 + $0x38] sm:$0xff] }
 0x13e   : > { %583 = vmatpush.msra.mxu1 %v576_v21  ;;  %v567_v39 = vld [vmem:[%s1401_s29 + $0x18] sm:$0xff]  ;;  %v566_v40 = vld [vmem:[%s1401_s29 + $0x10] sm:$0xff]  ;;  %v524_v42 = vld [vmem:[%s1396_s11 + $0x28] sm:$0xff] }
 0x13f   : > { %538 = vmatpush.msra.mxu0 %v531_v28  ;;  %v525_v41 = vld [vmem:[%s1396_s11 + $0x30] sm:$0xff]  ;;  %v565_v43 = vld [vmem:[%s1401_s29 + $0x8] sm:$0xff]  ;;  %v523_v44 = vld [vmem:[%s1396_s11 + $0x20] sm:$0xff] }
 0x140   : > { %584 = vmatpush.msra.mxu1 %v575_v23  ;;  %v564_v45 = vld [vmem:[%s1401_s29] sm:$0xff]  ;;  %v522_v46 = vld [vmem:[%s1396_s11 + $0x18] sm:$0xff]  ;;  %v1470_v47 = vld [vmem:[#allocation2 + $0x10] sm:$0xff] }
 0x141   : > { %539 = vmatpush.msra.mxu0 %v530_v30  ;;  %v521_v48 = vld [vmem:[%s1396_s11 + $0x10] sm:$0xff]  ;;  %v520_v49 = vld [vmem:[%s1396_s11 + $0x8] sm:$0xff]  ;;  %v519_v50 = vld [vmem:[%s1396_s11] sm:$0xff] }
 0x142   : > { %585 = vmatpush.msra.mxu1 %v574_v24  ;;  %v1476_v51 = vld [vmem:[#allocation2] sm:$0xff]  ;;  %v1480_v52 = vld [vmem:[#allocation2 + $0x18] sm:$0xff]  ;;  %v1484_v53 = vld [vmem:[#allocation2 + $0x8] sm:$0xff] }
 0x143   : > { %540 = vmatpush.msra.mxu0 %v529_v33  ;;  %v624_v62 = vld [vmem:[%s1406_s24 + $0x78] sm:$0xff]  ;;  %v623_v63 = vld [vmem:[%s1406_s24 + $0x70] sm:$0xff]  ;;  %v622_v0 = vld [vmem:[%s1406_s24 + $0x68] sm:$0xff] }
 0x144   : > { %586 = vmatpush.msra.mxu1 %v573_v27  ;;  %625 = vmatpush.msra.mxu2 %v624_v62  ;;  %v621_v1 = vld [vmem:[%s1406_s24 + $0x60] sm:$0xff]  ;;  %v620_v2 = vld [vmem:[%s1406_s24 + $0x58] sm:$0xff]  ;;  %v619_v3 = vld [vmem:[%s1406_s24 + $0x50] sm:$0xff] }
 0x145   : > { %541 = vmatpush.msra.mxu0 %v528_v34  ;;  %v618_v4 = vld [vmem:[%s1406_s24 + $0x48] sm:$0xff]  ;;  %v617_v5 = vld [vmem:[%s1406_s24 + $0x40] sm:$0xff]  ;;  %v616_v6 = vld [vmem:[%s1406_s24 + $0x38] sm:$0xff] }
 0x146   : > { %587 = vmatpush.msra.mxu1 %v572_v29  ;;  %626 = vmatpush.msra.mxu2 %v623_v63  ;;  %v615_v7 = vld [vmem:[%s1406_s24 + $0x30] sm:$0xff]  ;;  %v614_v8 = vld [vmem:[%s1406_s24 + $0x28] sm:$0xff]  ;;  %v613_v9 = vld [vmem:[%s1406_s24 + $0x20] sm:$0xff] }
 0x147   : > { %542 = vmatpush.msra.mxu0 %v527_v36  ;;  %v612_v10 = vld [vmem:[%s1406_s24 + $0x18] sm:$0xff]  ;;  %v611_v11 = vld [vmem:[%s1406_s24 + $0x10] sm:$0xff]  ;;  %v610_v12 = vld [vmem:[%s1406_s24 + $0x8] sm:$0xff] }
 0x148   : > { %588 = vmatpush.msra.mxu1 %v571_v31  ;;  %627 = vmatpush.msra.mxu2 %v622_v0  ;;  %v609_v14 = vld [vmem:[%s1406_s24] sm:$0xff] }
 0x149   : > { %543 = vmatpush.msra.mxu0 %v526_v38  ;;  %v794_v0 = vld [vmem:[#allocation3] sm:$0xff] }
 0x14a   : > { %589 = vmatpush.msra.mxu1 %v570_v32  ;;  %628 = vmatpush.msra.mxu2 %v621_v1 }
 0x14b   : > { %544 = vmatpush.msra.mxu0 %v525_v41 }
 0x14c   : > { %590 = vmatpush.msra.mxu1 %v569_v35  ;;  %629 = vmatpush.msra.mxu2 %v620_v2 }
 0x14d   : > { %545 = vmatpush.msra.mxu0 %v524_v42 }
 0x14e   : > { %591 = vmatpush.msra.mxu1 %v568_v37  ;;  %630 = vmatpush.msra.mxu2 %v619_v3  ;;  %v795_v3 = vld [vmem:[#allocation3 + $0x18] sm:$0xff] }
 0x14f   : > { %546 = vmatpush.msra.mxu0 %v523_v44 }
 0x150   : > { %592 = vmatpush.msra.mxu1 %v567_v39  ;;  %631 = vmatpush.msra.mxu2 %v618_v4 }
 0x151   : > { %547 = vmatpush.msra.mxu0 %v522_v46 }
 0x152   : > { %593 = vmatpush.msra.mxu1 %v566_v40  ;;  %632 = vmatpush.msra.mxu2 %v617_v5 }
 0x153   : > { %548 = vmatpush.msra.mxu0 %v521_v48 }
 0x154   : > { %594 = vmatpush.msra.mxu1 %v565_v43  ;;  %633 = vmatpush.msra.mxu2 %v616_v6  ;;  %v796_v6 = vld [vmem:[#allocation3 + $0x8] sm:$0xff] }
 0x155   : > { %549 = vmatpush.msra.mxu0 %v520_v49 }
 0x156   : > { %595 = vmatpush.msra.mxu1 %v564_v45  ;;  %634 = vmatpush.msra.mxu2 %v615_v7 }
 0x157   : > { %596 = vmatmul.f32.vlgmr.msra.gmra.mxu1 %v1470_v47  ;;  %550 = vmatpush.msra.mxu0 %v519_v50 }
 0x158   : > { %551 = vmatmul.f32.vlgmr.msra.gmra.mxu0 %v1470_v47  ;;  %635 = vmatpush.msra.mxu2 %v614_v8 }
 0x15a   : > { %636 = vmatpush.msra.mxu2 %v613_v9  ;;  %v797_v9 = vld [vmem:[#allocation3 + $0x10] sm:$0xff] }
 0x15c   : > { %637 = vmatpush.msra.mxu2 %v612_v10 }
 0x15e   : > { %638 = vmatpush.msra.mxu2 %v611_v11 }
 0x15f   : > { %599 = vmatmul.f32.gmra.mxu1 %v1476_v51 }
 0x160   : > { %554 = vmatmul.f32.gmra.mxu0 %v1476_v51  ;;  %639 = vmatpush.msra.mxu2 %v610_v12 }
 0x162   : > { %640 = vmatpush.msra.mxu2 %v609_v14 }
 0x163   : > { %641 = vmatmul.f32.vlgmr.msra.gmra.mxu2 %v1470_v47  ;;  %v799_v47 = vld [vmem:[%s1411_s14 + $0x8] sm:$0xff] }
 0x164   : > { %1059 = vmatpush.msrb.mxu1 %v799_v47  ;;  %1060 = vmatpush.msrb.mxu2 %v799_v47 }
 0x165   : > { %826 = vmatpush.msrb.mxu0 %v799_v47 }
 0x167   : > { %602 = vmatmul.f32.gmra.mxu1 %v1480_v52 }
 0x168   : > { %557 = vmatmul.f32.gmra.mxu0 %v1480_v52 }
 0x16b   : > { %644 = vmatmul.f32.gmra.mxu2 %v1476_v51 }
 0x16f   : > { %605 = vmatmul.f32.gmra.mxu1 %v1484_v53 }
 0x170   : > { %560 = vmatmul.f32.gmra.mxu0 %v1484_v53 }
 0x173   : > { %647 = vmatmul.f32.gmra.mxu2 %v1480_v52 }
 0x17b   : > { %650 = vmatmul.f32.gmra.mxu2 %v1484_v53 }
 0x1d4   : > { %v597_v54 = vpop.f32.mrf.mxu1 }
 0x1d5   : > { %v552_v58 = vpop.f32.mrf.mxu0 }
 0x1dc   : > { %v600_v55 = vpop.f32.mrf.mxu1 }
 0x1dd   : > { %v555_v59 = vpop.f32.mrf.mxu0 }
 0x1e4   : > { %v603_v56 = vpop.f32.mrf.mxu1 }
 0x1e5   : > { %v558_v60 = vpop.f32.mrf.mxu0 }
 0x1e6   : > { %v642_v32 = vpop.f32.mrf.mxu2 }
 0x1ec   : > { %v606_v57 = vpop.f32.mrf.mxu1 }
 0x1ed   : > { %1031 = vmatpush.xpose.msk.msra.mxu3 %vm654_vm13, %v606_v57  ;;  %v561_v61 = vpop.f32.mrf.mxu0 }
 0x1ee   : > { %v645_v38 = vpop.f32.mrf.mxu2 }
 0x1f1   : > { %1032 = vmatpush.xpose.msk.msra.mxu3 %vm654_vm13, %v603_v56 }
 0x1f5   : > { %1033 = vmatpush.xpose.msk.msra.mxu3 %vm654_vm13, %v600_v55 }
 0x1f6   : > { %v648_v42 = vpop.f32.mrf.mxu2 }
 0x1f9   : > { %1034 = vmatpush.xpose.msk.msra.mxu3 %vm654_vm13, %v597_v54 }
 0x1fc   : > { %1035 = vmatmul.msk.f32.vlgmr.msra.gmra.mxu3 %vm654_vm13, %v552_v58 }
 0x1fe   : > { %v651_v45 = vpop.f32.mrf.mxu2 }
 0x1ff   : > { %777 = vmatpush.msrb.mxu3 %v651_v45 }
 0x201   : > { %778 = vmatpush.msrb.mxu3 %v648_v42 }
 0x203   : > { %779 = vmatpush.msrb.mxu3 %v645_v38 }
 0x204   : > { %1036 = vmatmul.msk.f32.gmra.mxu3 %vm654_vm13, %v555_v59  ;;  %v798_v59 = vld [vmem:[%s1411_s14] sm:$0xff] }
 0x205   : > { %780 = vmatpush.msrb.mxu3 %v642_v32  ;;  %827 = vmatpush.msrb.mxu0 %v798_v59 }
 0x206   : > { %1061 = vmatpush.msrb.mxu1 %v798_v59  ;;  %1062 = vmatpush.msrb.mxu2 %v798_v59 }
 0x20c   : > { %1037 = vmatmul.msk.f32.gmra.mxu3 %vm654_vm13, %v558_v60 }
 0x214   : > { %1038 = vmatmul.msk.f32.gmra.mxu3 %vm654_vm13, %v561_v61 }
 0x27f   : > { %v696_v13 = vpop.f32.mrf.mxu3 }
 0x280   : > { %v709_v15 = vsel %vm708_vm14, %v696_v13, -inf }
 0x281   : > { %710 = vmax.xlane.f32.xlu0 %v709_v15 }
 0x287   : > { %v699_v16 = vpop.f32.mrf.mxu3 }
 0x288   : > { %v712_v17 = vsel %vm708_vm14, %v699_v16, -inf }
 0x289   : > { %713 = vmax.xlane.f32.xlu0 %v712_v17 }
 0x28f   : > { %v702_v18 = vpop.f32.mrf.mxu3 }
 0x290   : > { %v715_v19 = vsel %vm708_vm14, %v702_v18, -inf }
 0x291   : > { %716 = vmax.xlane.f32.xlu1 %v715_v19 }
 0x297   : > { %v705_v20 = vpop.f32.mrf.mxu3 }
 0x298   : > { %v718_v21 = vsel %vm708_vm14, %v705_v20, -inf }
 0x299   : > { %719 = vmax.xlane.f32.xlu1 %v718_v21 }
 0x2f4   : > { %v711_v22 = vpop.xlane.xlu0 %710 }
 0x2f5   : > { %v721_v23 = vsub.f32 %v696_v13, %v711_v22 }
 0x2f7   : > { %v725_v24 = vmul.f32 1.442695, %v721_v23 }
 0x2f9   : > { %1150 = vpow2.f32 %v725_v24 }
 0x2fc   : > { %v714_v25 = vpop.xlane.xlu0 %713 }
 0x2fd   : > { %v722_v26 = vsub.f32 %v699_v16, %v714_v25 }
 0x2ff   : > { %v1151_v27 = vpop.eup %1150  ;;  %v727_v28 = vmul.f32 1.442695, %v722_v26 }
 0x300   : > { %v733_v29 = vsel %vm708_vm14, %v1151_v27, 0.0 }
 0x301   : > { %1152 = vpow2.f32 %v727_v28  ;;  %734 = vadd.xlane.f32.xlu2 %v733_v29 }
 0x304   : > { %v717_v30 = vpop.xlane.xlu1 %716 }
 0x305   : > { %v723_v31 = vsub.f32 %v702_v18, %v717_v30 }
 0x307   : > { %v1153_v33 = vpop.eup %1152  ;;  %v729_v34 = vmul.f32 1.442695, %v723_v31 }
 0x308   : > { %v736_v35 = vsel %vm708_vm14, %v1153_v33, 0.0 }
 0x309   : > { %1154 = vpow2.f32 %v729_v34  ;;  %737 = vadd.xlane.f32.xlu2 %v736_v35 }
 0x30c   : > { %v720_v36 = vpop.xlane.xlu1 %719 }
 0x30d   : > { %v724_v37 = vsub.f32 %v705_v20, %v720_v36 }
 0x30f   : > { %v1155_v39 = vpop.eup %1154  ;;  %v731_v40 = vmul.f32 1.442695, %v724_v37 }
 0x310   : > { %v739_v41 = vsel %vm708_vm14, %v1155_v39, 0.0 }
 0x311   : > { %1156 = vpow2.f32 %v731_v40  ;;  %740 = vadd.xlane.f32.xlu0 %v739_v41 }
 0x317   : > { %v1157_v43 = vpop.eup %1156 }
 0x318   : > { %v742_v44 = vsel %vm708_vm14, %v1157_v43, 0.0 }
 0x319   : > { %743 = vadd.xlane.f32.xlu1 %v742_v44 }
 0x374   : > { %v735_v46 = vpop.xlane.xlu2 %734 }
 0x375   : > { %1158 = vrcp.f32 %v735_v46 }
 0x37b   : > { %v1159_v48 = vpop.eup %1158 }
 0x37c   : > { %v738_v49 = vpop.xlane.xlu2 %737  ;;  %v749_v50 = vmul.f32 %v1159_v48, %v1151_v27 }
 0x37d   : > { %1160 = vrcp.f32 %v738_v49 }
 0x37e   : > { %1039 = vmatmul.msk.f32.vlgmr.msrb.gmra.mxu3 %vm708_vm14, %v749_v50 }
 0x383   : > { %v1161_v51 = vpop.eup %1160 }
 0x384   : > { %v741_v52 = vpop.xlane.xlu0 %740  ;;  %v750_v53 = vmul.f32 %v1161_v51, %v1153_v33 }
 0x385   : > { %1162 = vrcp.f32 %v741_v52 }
 0x386   : > { %1040 = vmatmul.msk.f32.gmra.mxu3 %vm708_vm14, %v750_v53 }
 0x38b   : > { %v1163_v54 = vpop.eup %1162 }
 0x38c   : > { %v744_v55 = vpop.xlane.xlu1 %743  ;;  %v751_v56 = vmul.f32 %v1163_v54, %v1155_v39 }
 0x38d   : > { %1164 = vrcp.f32 %v744_v55 }
 0x38e   : > { %1041 = vmatmul.msk.f32.gmra.mxu3 %vm708_vm14, %v751_v56 }
 0x393   : > { %v1165_v57 = vpop.eup %1164 }
 0x394   : > { %v752_v58 = vmul.f32 %v1165_v57, %v1157_v43 }
 0x396   : > { %1042 = vmatmul.msk.f32.gmra.mxu3 %vm708_vm14, %v752_v58 }
 0x401   : > { %v782_v60 = vpop.f32.mrf.mxu3 }
 0x402   : > { %1043 = vmatmul.msk.f32.vlgmr.msrb.gmra.mxu0 %vm654_vm13, %v782_v60 }
 0x409   : > { %v785_v61 = vpop.f32.mrf.mxu3 }
 0x40a   : > { %1044 = vmatmul.msk.f32.vlgmr.msrb.gmra.mxu1 %vm654_vm13, %v785_v61 }
 0x411   : > { %v788_v62 = vpop.f32.mrf.mxu3 }
 0x412   : > { %1045 = vmatmul.msk.f32.gmra.mxu1 %vm654_vm13, %v788_v62 }
 0x419   : > { %v791_v63 = vpop.f32.mrf.mxu3 }
 0x41a   : > { %1046 = vmatmul.msk.f32.vlgmr.msrb.gmra.mxu2 %vm654_vm13, %v791_v63 }
 0x47f   : > { %v829_v1 = vpop.f32.mrf.mxu0 }
 0x480   : > { %v841_v2 = vadd.f32 %v829_v1, %v794_v0 }
 0x482   : > { %845 = vst [vmem:[#allocation3] sm:$0xff] %v841_v2 }
 0x487   : > { %v832_v4 = vpop.f32.mrf.mxu1 }
 0x488   : > { %v842_v5 = vadd.f32 %v832_v4, %v795_v3 }
 0x48a   : > { %846 = vst [vmem:[#allocation3 + $0x18] sm:$0xff] %v842_v5 }
 0x48f   : > { %v835_v7 = vpop.f32.mrf.mxu1 }
 0x490   : > { %v843_v8 = vadd.f32 %v835_v7, %v796_v6 }
 0x492   : > { %847 = vst [vmem:[#allocation3 + $0x8] sm:$0xff] %v843_v8 }
 0x49c   : > { %852 = sbr.rel (%p1047_p1) target bundleno = 1197 (0x4ad), region = 60 }
 0x49d   : > { %v838_v10 = vpop.f32.mrf.mxu2 }
 0x49e   : > { %v844_v11 = vadd.f32 %v838_v10, %v797_v9 }
 0x4a0   : > { %848 = vst [vmem:[#allocation3 + $0x10] sm:$0xff] %v844_v11 }
 0x4a1   : > { %v853_v12 = vld [vmem:[%s1391_s19] sm:$0xff]  ;;  %v854_v16 = vld [vmem:[%s1391_s19 + $0x8] sm:$0xff]  ;;  %v858_v17 = vld [vmem:[#allocation3 + $0x18] sm:$0xff] }
 0x4a2   : > { %v857_v13 = vld [vmem:[#allocation3] sm:$0xff]  ;;  %v862_v18 = vadd.f32 %v858_v17, %v854_v16  ;;  %v855_v19 = vld [vmem:[%s1391_s19 + $0x10] sm:$0xff]  ;;  %v859_v20 = vld [vmem:[#allocation3 + $0x8] sm:$0xff] }
 0x4a3   : > { %v861_v14 = vadd.f32 %v857_v13, %v853_v12  ;;  %v1166_v15 = vld [vmem:[%s1599_s7] ss:$0 sm:$0xff]  ;;  %v856_v21 = vld [vmem:[%s1391_s19 + $0x18] sm:$0xff]  ;;  %v863_v23 = vadd.f32 %v859_v20, %v855_v19 }
 0x4a4   : > { %v870_v25 = vadd.f32 %v1166_v15, %v862_v18 }
 0x4a5   : > { %v869_v22 = vadd.f32 %v1166_v15, %v861_v14  ;;  %v871_v27 = vadd.f32 %v1166_v15, %v863_v23 }
 0x4a6   : > { %874 = vst [vmem:[%s1413_s0 + $0x8] sm:$0xff] %v870_v25 }
 0x4a7   : > { %v860_v24 = vld [vmem:[#allocation3 + $0x10] sm:$0xff]  ;;  %873 = vst [vmem:[%s1413_s0] sm:$0xff] %v869_v22 }
 0x4a8   : > { %v864_v26 = vadd.f32 %v860_v24, %v856_v21  ;;  %875 = vst [vmem:[%s1413_s0 + $0x10] sm:$0xff] %v871_v27 }
 0x4aa   : > { %v872_v28 = vadd.f32 %v1166_v15, %v864_v26 }
 0x4ac   : > { %876 = vst [vmem:[%s1413_s0 + $0x18] sm:$0xff] %v872_v28 }
 0x4ad PF: > { %s1058_s30 = sshll.u32 %s1249_s9, 5  ;;  %s890_s23 = sshll.u32 %s1413_s0, 4  ;;  %s891_s23 = int_to_ptr.vmem [resolvable:$true] %s890_s23 }
 0x4ae   : > { %s889_s22 = scalar_lea.hbm %s1600_s8, %s1058_s30  ;;  %s1620_s19 = sand.u32 1, %s1237_s28  }
 0x4af   : > { %s892_s25 = sshll.u32 %s889_s22, 4  ;;  %s878_s20 = scalar_lea.sflag [#allocation5], %s1620_s19  ;;  %s893_s25 = int_to_ptr.hbm [resolvable:$true] %s892_s25 }
 0x4b0   : > { %s1181_s24 = sshra.s32 %s893_s25, 4  ;;  %s1187_s9 = scalar_lea.hbm %s1600_s8, 64  ;;  %s1182_s24 = int_to_ptr.hbm [resolvable:$true] %s1181_s24 }
 0x4b1   : > { %s1183_s13 = scalar_lea.hbm %s1182_s24, 32  ;;  %p1188_p6 = scmp.lt.s32.totalorder %s1182_s24, %s1600_s8 }
 0x4b2   : > { %p1184_p2 = scmp.ne.s32.totalorder %s1182_s24, %s1183_s13  ;;  %p1189_p7 = scmp.lt.s32.totalorder %s1187_s9, %s1183_s13 }
 0x4b4   : > { %p1185_p4 = pnand %p1184_p2, %p1361_p3  ;;  %p1190_p8 = por %p1189_p7, %p1188_p6 }
 0x4b6   : > { %p1186_p5 = pneg %p1185_p4 }
 0x4b8   : > { %p1191_p10 = pnand %p1190_p8, %p1186_p5 }
 0x4ba   : > { %1194 = shalt.err (!%p1191_p10)
}
 0x4bb   : > { %s1265_s0 = smov 128   ;;  %s1266_s15 = smov 8  }
 0x4bc   : > { %1063 = dma.vmem_to_hbm [thread:$0]  (%p1361_p3), %s891_s23, 512, %s893_s25, %s878_s20, %s1265_s0, %s1265_s0, %s1266_s15  }
 0x4bd PF: > { %s1621_s16 = sld [smem:[#allocation7_spill]]  ;;  %p1069_p11 = scmp.ge.s32.totalorder %s1261_s12, 2 }
 0x4bf   : > { %p1066_p12 = pnand %p1069_p11, %p1371_p9 }
 0x4c1   : > { %p1067_p13 = pneg %p1066_p12 }
 0x4c3   : > { %s907_s11 = sand.u32 1, %s1621_s16  }
 0x4c4   : > { %s908_s30 = scalar_lea.sflag [#allocation5], %s907_s11 }
 0x4c5   : > { %1228 = dma.done.wait (%p1067_p13), %s908_s30, 512  }
 0x4c6   : > { %1230 = vsyncadd (%p1067_p13), %s908_s30, 4294966784  ;;  %s21_s12 = sadd.s32 1, %s1261_s12   ;;  %s1623_s18 = sld [smem:[#allocation8_spill]] }
 0x4c7   : > { %p18_p0 = scmp.ge.s32.totalorder %s21_s12, 18   ;;  %s1624_s29 = sld [smem:[#allocation14_spill]] }
 0x4c8   : > { %s1625_s30 = sld [smem:[#allocation9_spill]]  ;;  %s1629_s27 = smov %s1237_s28 }
 0x4c9   : > { %s1626_s9 = sld [smem:[#allocation10_spill]]  ;;  %20 = sbr.rel (!%p18_p0) target bundleno = 7 (0x7), region = 107 }
 0x4ca   : > { %s1627_s10 = sld [smem:[#allocation11_spill]] }
 0x4cb   : > { %s1628_s11 = sld [smem:[#allocation12_spill]] }
 0x4cc   : > { %s1630_s28 = smov %s1623_s18 }
 0x4ce   :  { %914 = vsyncpa [#allocation5], 1 }
 0x4cf   :  { %916 = vsyncpa [#allocation5 + $0x1], 1 }

// kernel: tpu_custom_call.1
= control target key start
LH: loop header
LB: loop body
LE: loop exit
PB: predicated region body
PF: predicated region fallthrough
CT: control target
= control target key end

     0   :  { %s1592_s0 = inlined_call_operand.vmem [shape: f32[2,32,128], index: 0, kind: input, shape index: {}]   ;;  %s1593_s1 = inlined_call_operand.vmem [shape: f32[1,128], index: 1, kind: input, shape index: {}]   ;;  %s1594_s2 = inlined_call_operand.vmem [shape: f32[1,128], index: 2, kind: input, shape index: {}]   ;;  %s1595_s3 = inlined_call_operand.vmem [shape: f32[8,128,16], index: 3, kind: input, shape index: {}]   ;;  %s1596_s4 = inlined_call_operand.vmem [shape: f32[8,128,16], index: 4, kind: input, shape index: {}]   ;;  %s1597_s5 = inlined_call_operand.vmem [shape: f32[8,128,16], index: 5, kind: input, shape index: {}]   ;;  %s1598_s6 = inlined_call_operand.vmem [shape: f32[8,16,128], index: 6, kind: input, shape index: {}]   ;;  %s1599_s7 = inlined_call_operand.vmem [shape: f32[1,128], index: 7, kind: input, shape index: {}]   ;;  %s1600_s8 = inlined_call_operand.hbm [shape: f32[2,32,128], index: 8, kind: output, shape index: {}]  }
   0x1   :  { %1608 = sst [smem:[#allocation15_spill]] %s1592_s0 }
   0x2   :  { %13 = vsyncpa [#allocation5], 0 }
   0x3   :  { %15 = vsyncpa [#allocation5 + $0x1], 0  ;;  %s1312_s27 = smov 0   ;;  %s1314_s28 = smov 0  }
   0x4   :  { %s1316_s29 = smov 0   ;;  %s1318_s30 = smov 0  }
   0x5   :  { %s1320_s9 = smov 0   ;;  %s1322_s10 = smov 0  }
   0x6   :  { %s1324_s11 = smov 0   ;;  %s1326_s12 = smov 0  }
   0x7 LB: > { %1609 = sst [smem:[#allocation7_spill]] %s1233_s27  ;;  %s1014_s13 = sadd.s32 4294967295, %s1261_s12   ;;  %s1261_s12 = sphi %s1326_s12, %s21_s12   ;;  %s1257_s11 = sphi %s1324_s11, %s1628_s11   ;;  %s1253_s10 = sphi %s1322_s10, %s1627_s10   ;;  %s1249_s9 = sphi %s1320_s9, %s1626_s9   ;;  %s1245_s30 = sphi %s1318_s30, %s1625_s30   ;;  %s1241_s29 = sphi %s1316_s29, %s1624_s29   ;;  %s1237_s28 = sphi %s1314_s28, %s1630_s28   ;;  %s1233_s27 = sphi %s1312_s27, %s1629_s27  }
   0x8   : > { %1610 = sst [smem:[#allocation8_spill]] %s1241_s29  ;;  %s1015_s14 = sadd.s32 4294967294, %s1261_s12  }
   0x9   : > { %1611 = sst [smem:[#allocation9_spill]] %s1253_s10  ;;  %s30_s15 = sadd.s32 1, %s1253_s10 }
   0xa   : > { %1612 = sst [smem:[#allocation10_spill]] %s1257_s11  ;;  %p31_p0 = scmp.ge.s32.totalorder %s30_s15, 8 }
   0xb   : > { %s33_s16 = sadd.s32 1, %s1257_s11  ;;  %p243_p1 = scmp.ne.s32.totalorder %s1241_s29, %s1237_s28 }
   0xc   : > { %p244_p2 = scmp.eq.s32.totalorder %s1014_s13, 15  ;;  %s1632_s15 = smov (%p31_p0, %s30_s15), 0 }
   0xd   : > { %1613 = sst [smem:[#allocation11_spill]] %s1632_s15  ;;  %s1634_s16 = smov (!%p31_p0, %s33_s16), %s1257_s11 }
   0xe   : > { %p1361_p3 = por %p244_p2, %p243_p1  ;;  %p249_p4 = scmp.ne.s32.totalorder %s1237_s28, %s1233_s27 }
   0xf   : > { %p35_p5 = scmp.ge.s32.totalorder %s1634_s16, 2  ;;  %p250_p6 = scmp.eq.s32.totalorder %s1015_s14, 15 }
  0x10   : > { %p1018_p7 = scmp.ge.s32.totalorder %s1261_s12, 1  ;;  %p317_p8 = scmp.lt.s32.totalorder %s1261_s12, 17 }
  0x11   : > { %s1636_s16 = smov (%p35_p5, %s1634_s16), 0  ;;  %p1371_p9 = por %p250_p6, %p249_p4 }
  0x12   : > { %1615 = sst [smem:[#allocation12_spill]] %s1636_s16  ;;  %p318_p10 = pnand %p1018_p7, %p317_p8 }
  0x13   : > { %s1616_s18 = scalar_select %p1371_p9, 1, 0 }
  0x14   : > { %s230_s19 = ssub.s32 %s1257_s11, %s1636_s16  ;;  %s233_s20 = sadd.s32 1, %s1241_s29 }
  0x15   : > { %1617 = sst [smem:[#allocation13_spill]] %s1616_s18  ;;  %p231_p11 = scmp.eq.s32.totalorder %s230_s19, 0 }
  0x16   : > { %321 = sbr.rel (%p318_p10) target bundleno = 1213 (0x4bd), region = 52  ;;  %s1605_s22 = sand.u32 (!%p318_p10), 1, %s1237_s28  }
  0x17   : > { %s1379_s21 = scalar_select %p231_p11, %s1241_s29, %s233_s20  }
  0x18   : > { %p371_p12 = scmp.lt.s32.totalorder (!%p318_p10), %s1249_s9, 1  ;;  %s1019_s23 = sshll.u32 (!%p318_p10), %s1605_s22, 5 }
  0x19   : > { %1618 = sst [smem:[#allocation14_spill]] %s1379_s21  ;;  %p376_p13 = scmp.lt.s32.totalorder (!%p318_p10), %s1245_s30, 7 }
  0x1a   : > { %s1619_s0 = sld [smem:[#allocation15_spill]] (!%p318_p10)  ;;  %p1030_p0 = scmp.ne.s32.totalorder (!%p318_p10), %s1245_s30, 0 }
  0x1b   : > { %s372_s24 = scalar_select %p371_p12, %s1249_s9, 1 }
  0x1c   : > { %s377_s25 = scalar_select %p376_p13, %s1245_s30, 7 }
  0x1d   : > { %s1053_s26 = sshll.u32 %s372_s24, 5  ;;  %399 = sbr.rel (%p1030_p0) target bundleno = 311 (0x137), region = 56 }
  0x1e   : > { %s1054_s20 = sshll.u32 %s377_s25, 7  ;;  %s1057_s27 = sshll.u32 %s377_s25, 4 }
  0x1f   : > { %s1396_s11 = scalar_lea.vmem %s1595_s3, %s1054_s20  ;;  %s1401_s29 = scalar_lea.vmem %s1596_s4, %s1054_s20 }
  0x20   : > { %s1391_s19 = scalar_lea.vmem %s1619_s0, %s1053_s26  ;;  %s1406_s24 = scalar_lea.vmem %s1597_s5, %s1054_s20 }
  0x21   : > { %s1411_s14 = scalar_lea.vmem %s1598_s6, %s1057_s27  ;;  %s1413_s0 = scalar_lea.vmem [#allocation4], %s1019_s23 }
  0x22   : > { %v402_v0 = vld [vmem:[%s1391_s19 + $0x10] sm:$0xff]  ;;  %v400_v1 = vld [vmem:[%s1391_s19] sm:$0xff]  ;;  %v403_v2 = vld [vmem:[%s1391_s19 + $0x18] sm:$0xff]  ;;  %v1263_v4 = vmov 128.0   ;;  %v1264_v33 = vmov 0.0  }
  0x23   : > { %408 = vadd.xlane.f32.xlu1 %v402_v0  ;;  %404 = vadd.xlane.f32.xlu0 %v400_v1  ;;  %v401_v3 = vld [vmem:[%s1391_s19 + $0x8] sm:$0xff]  ;;  %1140 = vrcp.f32 %v1263_v4  ;;  %511 = vst [vmem:[#allocation3] sm:$0xff] %v1264_v33  ;;  %v1138_v54 = vld [vmem:[%s1593_s1] ss:$0 sm:$0xff] }
  0x24   : > { %512 = vst [vmem:[#allocation3 + $0x18] sm:$0xff] %v1264_v33  ;;  %v1139_v59 = vld [vmem:[%s1594_s2] ss:$0 sm:$0xff] }
  0x25   : > { %513 = vst [vmem:[#allocation3 + $0x8] sm:$0xff] %v1264_v33 }
  0x26   : > { %514 = vst [vmem:[#allocation3 + $0x10] sm:$0xff] %v1264_v33 }
  0x29   : > { %v1141_v5 = vpop.eup %1140 }
  0x2a   : > { %v413_v6 = vmul.f32 128.0, %v1141_v5  ;;  %vm417_vm0 = vweird.f32 %v1141_v5 }
  0x2b   : > { %410 = vadd.xlane.f32.xlu1 %v403_v2  ;;  %406 = vadd.xlane.f32.xlu0 %v401_v3 }
  0x2c   : > { %v414_v7 = vsub.f32 1.0, %v413_v6 }
  0x2e   : > { %v415_v8 = vmul.f32 %v1141_v5, %v414_v7 }
  0x30   : > { %v416_v9 = vadd.f32 %v1141_v5, %v415_v8 }
  0x32   : > { %v418_v10 = vsel %vm417_vm0, %v1141_v5, %v416_v9 }
  0x96   : > { %v409_v11 = vpop.xlane.xlu1 %408  ;;  %v405_v12 = vpop.xlane.xlu0 %404 }
  0x97   : > { %v421_v13 = vmul.f32 %v418_v10, %v409_v11  ;;  %v419_v14 = vmul.f32 %v418_v10, %v405_v12 }
  0x99   : > { %v1420_v15 = vsub.f32 %v402_v0, %v421_v13  ;;  %v423_v16 = vsub.f32 %v400_v1, %v419_v14 }
  0x9b   : > { %v429_v17 = vmul.f32 %v1420_v15, %v1420_v15  ;;  %v427_v18 = vmul.f32 %v423_v16, %v423_v16 }
  0x9d   : > { %435 = vadd.xlane.f32.xlu0 %v429_v17  ;;  %431 = vadd.xlane.f32.xlu2 %v427_v18 }
  0x9e   : > { %v411_v19 = vpop.xlane.xlu1 %410  ;;  %v407_v20 = vpop.xlane.xlu0 %406 }
  0x9f   : > { %v422_v21 = vmul.f32 %v418_v10, %v411_v19  ;;  %v420_v22 = vmul.f32 %v418_v10, %v407_v20 }
  0xa1   : > { %v1424_v23 = vsub.f32 %v403_v2, %v422_v21  ;;  %v1426_v24 = vsub.f32 %v401_v3, %v420_v22 }
  0xa3   : > { %v430_v25 = vmul.f32 %v1424_v23, %v1424_v23  ;;  %v428_v26 = vmul.f32 %v1426_v24, %v1426_v24 }
  0xa5   : > { %437 = vadd.xlane.f32.xlu1 %v430_v25  ;;  %433 = vadd.xlane.f32.xlu2 %v428_v26 }
 0x110   : > { %v432_v27 = vpop.xlane.xlu2 %431  ;;  %v436_v28 = vpop.xlane.xlu0 %435 }
 0x111   : > { %v439_v29 = vmul.f32 %v432_v27, %v418_v10  ;;  %v441_v30 = vmul.f32 %v436_v28, %v418_v10 }
 0x113   : > { %v443_v31 = vadd.f32 1e-05, %v439_v29  ;;  %v445_v32 = vadd.f32 1e-05, %v441_v30 }
 0x115   : > { %1142 = vrsqrt.f32 %v443_v31  ;;  %vm453_vm3 = vweird.f32 %v443_v31  ;;  %vm473_vm5 = vweird.f32 %v445_v32 }
 0x116   : > { %1144 = vrsqrt.f32 %v445_v32 }
 0x118   : > { %v438_v34 = vpop.xlane.xlu1 %437  ;;  %v434_v35 = vpop.xlane.xlu2 %433 }
 0x119   : > { %v442_v36 = vmul.f32 %v438_v34, %v418_v10  ;;  %v440_v37 = vmul.f32 %v434_v35, %v418_v10 }
 0x11b   : > { %v1143_v38 = vpop.eup %1142  ;;  %v446_v39 = vadd.f32 1e-05, %v442_v36  ;;  %v444_v40 = vadd.f32 1e-05, %v440_v37 }
 0x11c   : > { %v1145_v41 = vpop.eup %1144  ;;  %v448_v42 = vmul.f32 %v1143_v38, %v443_v31  ;;  %vm454_vm1 = vweird.f32 %v1143_v38 }
 0x11d   : > { %v468_v43 = vmul.f32 %v1145_v41, %v445_v32  ;;  %1146 = vrsqrt.f32 %v446_v39  ;;  %vm474_vm2 = vweird.f32 %v1145_v41  ;;  %vm455_vm4 = vmor %vm453_vm3, %vm454_vm1  ;;  %vm483_vm9 = vweird.f32 %v446_v39 }
 0x11e   : > { %v449_v44 = vmul.f32 %v1143_v38, %v448_v42  ;;  %1148 = vrsqrt.f32 %v444_v40  ;;  %vm475_vm6 = vmor %vm473_vm5, %vm474_vm2  ;;  %vm463_vm11 = vweird.f32 %v444_v40 }
 0x11f   : > { %v469_v45 = vmul.f32 %v1145_v41, %v468_v43 }
 0x120   : > { %v450_v46 = vmul.f32 0.5, %v449_v44 }
 0x121   : > { %v470_v47 = vmul.f32 0.5, %v469_v45 }
 0x122   : > { %v451_v48 = vsub.f32 1.5, %v450_v46 }
 0x123   : > { %v1147_v49 = vpop.eup %1146  ;;  %v471_v50 = vsub.f32 1.5, %v470_v47 }
 0x124   : > { %v1149_v51 = vpop.eup %1148  ;;  %v452_v52 = vmul.f32 %v1143_v38, %v451_v48  ;;  %v478_v53 = vmul.f32 %v1147_v49, %v446_v39  ;;  %vm484_vm7 = vweird.f32 %v1147_v49 }
 0x125   : > { %v472_v55 = vmul.f32 %v1145_v41, %v471_v50  ;;  %v458_v56 = vmul.f32 %v1149_v51, %v444_v40  ;;  %vm464_vm8 = vweird.f32 %v1149_v51  ;;  %vm485_vm10 = vmor %vm483_vm9, %vm484_vm7 }
 0x126   : > { %v456_v57 = vsel %vm455_vm4, %v1143_v38, %v452_v52  ;;  %v479_v58 = vmul.f32 %v1147_v49, %v478_v53  ;;  %vm465_vm12 = vmor %vm463_vm11, %vm464_vm8 }
 0x127   : > { %v487_v60 = vmul.f32 %v456_v57, %v423_v16  ;;  %v476_v61 = vsel %vm475_vm6, %v1145_v41, %v472_v55  ;;  %v459_v62 = vmul.f32 %v1149_v51, %v458_v56 }
 0x128   : > { %v489_v63 = vmul.f32 %v476_v61, %v1420_v15  ;;  %v480_v0 = vmul.f32 0.5, %v479_v58 }
 0x129   : > { %v495_v1 = vmul.f32 %v1138_v54, %v487_v60  ;;  %v460_v2 = vmul.f32 0.5, %v459_v62 }
 0x12a   : > { %v497_v3 = vmul.f32 %v1138_v54, %v489_v63  ;;  %v481_v4 = vsub.f32 1.5, %v480_v0 }
 0x12b   : > { %v503_v5 = vadd.f32 %v1139_v59, %v495_v1  ;;  %v461_v6 = vsub.f32 1.5, %v460_v2 }
 0x12c   : > { %v505_v7 = vadd.f32 %v1139_v59, %v497_v3  ;;  %v482_v8 = vmul.f32 %v1147_v49, %v481_v4 }
 0x12d   : > { %507 = vst [vmem:[#allocation2 + $0x10] sm:$0xff] %v503_v5  ;;  %v462_v9 = vmul.f32 %v1149_v51, %v461_v6 }
 0x12e   : > { %509 = vst [vmem:[#allocation2 + $0x18] sm:$0xff] %v505_v7  ;;  %v486_v10 = vsel %vm485_vm10, %v1147_v49, %v482_v8 }
 0x12f   : > { %v490_v11 = vmul.f32 %v486_v10, %v1424_v23  ;;  %v466_v12 = vsel %vm465_vm12, %v1149_v51, %v462_v9 }
 0x130   : > { %v488_v13 = vmul.f32 %v466_v12, %v1426_v24 }
 0x131   : > { %v498_v14 = vmul.f32 %v1138_v54, %v490_v11 }
 0x132   : > { %v496_v15 = vmul.f32 %v1138_v54, %v488_v13 }
 0x133   : > { %v506_v16 = vadd.f32 %v1139_v59, %v498_v14 }
 0x134   : > { %v504_v17 = vadd.f32 %v1139_v59, %v496_v15 }
 0x135   : > { %510 = vst [vmem:[#allocation2 + $0x8] sm:$0xff] %v506_v16 }
 0x136   : > { %508 = vst [vmem:[#allocation2] sm:$0xff] %v504_v17 }
 0x137 PF: > { %v579_v18 = vld [vmem:[%s1401_s29 + $0x78] sm:$0xff]  ;;  %v578_v19 = vld [vmem:[%s1401_s29 + $0x70] sm:$0xff]  ;;  %v577_v20 = vld [vmem:[%s1401_s29 + $0x68] sm:$0xff]  ;;  %vm654_vm13 = vcmask 130048   ;;  %vm708_vm14 = vcmask 261120   ;;  %p1047_p1 = scmp.ne.s32.totalorder %s1245_s30, 7 }
 0x138   : > { %580 = vmatpush.msra.mxu1 %v579_v18  ;;  %v576_v21 = vld [vmem:[%s1401_s29 + $0x60] sm:$0xff]  ;;  %v534_v22 = vld [vmem:[%s1396_s11 + $0x78] sm:$0xff]  ;;  %v574_v24 = vld [vmem:[%s1401_s29 + $0x50] sm:$0xff] }
 0x139   : > { %v575_v23 = vld [vmem:[%s1401_s29 + $0x58] sm:$0xff]  ;;  %535 = vmatpush.msra.mxu0 %v534_v22  ;;  %v533_v25 = vld [vmem:[%s1396_s11 + $0x70] sm:$0xff]  ;;  %v532_v26 = vld [vmem:[%s1396_s11 + $0x68] sm:$0xff] }
 0x13a   : > { %581 = vmatpush.msra.mxu1 %v578_v19  ;;  %v573_v27 = vld [vmem:[%s1401_s29 + $0x48] sm:$0xff]  ;;  %v531_v28 = vld [vmem:[%s1396_s11 + $0x60] sm:$0xff]  ;;  %v530_v30 = vld [vmem:[%s1396_s11 + $0x58] sm:$0xff] }
 0x13b   : > { %536 = vmatpush.msra.mxu0 %v533_v25  ;;  %v572_v29 = vld [vmem:[%s1401_s29 + $0x40] sm:$0xff]  ;;  %v571_v31 = vld [vmem:[%s1401_s29 + $0x38] sm:$0xff]  ;;  %v570_v32 = vld [vmem:[%s1401_s29 + $0x30] sm:$0xff] }
 0x13c   : > { %582 = vmatpush.msra.mxu1 %v577_v20  ;;  %v529_v33 = vld [vmem:[%s1396_s11 + $0x50] sm:$0xff]  ;;  %v528_v34 = vld [vmem:[%s1396_s11 + $0x48] sm:$0xff]  ;;  %v527_v36 = vld [vmem:[%s1396_s11 + $0x40] sm:$0xff] }
 0x13d   : > { %537 = vmatpush.msra.mxu0 %v532_v26  ;;  %v569_v35 = vld [vmem:[%s1401_s29 + $0x28] sm:$0xff]  ;;  %v568_v37 = vld [vmem:[%s1401_s29 + $0x20] sm:$0xff]  ;;  %v526_v38 = vld [vmem:[%s1396_s11 + $0x38] sm:$0xff] }
 0x13e   : > { %583 = vmatpush.msra.mxu1 %v576_v21  ;;  %v567_v39 = vld [vmem:[%s1401_s29 + $0x18] sm:$0xff]  ;;  %v566_v40 = vld [vmem:[%s1401_s29 + $0x10] sm:$0xff]  ;;  %v524_v42 = vld [vmem:[%s1396_s11 + $0x28] sm:$0xff] }
 0x13f   : > { %538 = vmatpush.msra.mxu0 %v531_v28  ;;  %v525_v41 = vld [vmem:[%s1396_s11 + $0x30] sm:$0xff]  ;;  %v565_v43 = vld [vmem:[%s1401_s29 + $0x8] sm:$0xff]  ;;  %v523_v44 = vld [vmem:[%s1396_s11 + $0x20] sm:$0xff] }
 0x140   : > { %584 = vmatpush.msra.mxu1 %v575_v23  ;;  %v564_v45 = vld [vmem:[%s1401_s29] sm:$0xff]  ;;  %v522_v46 = vld [vmem:[%s1396_s11 + $0x18] sm:$0xff]  ;;  %v1470_v47 = vld [vmem:[#allocation2 + $0x10] sm:$0xff] }
 0x141   : > { %539 = vmatpush.msra.mxu0 %v530_v30  ;;  %v521_v48 = vld [vmem:[%s1396_s11 + $0x10] sm:$0xff]  ;;  %v520_v49 = vld [vmem:[%s1396_s11 + $0x8] sm:$0xff]  ;;  %v519_v50 = vld [vmem:[%s1396_s11] sm:$0xff] }
 0x142   : > { %585 = vmatpush.msra.mxu1 %v574_v24  ;;  %v1476_v51 = vld [vmem:[#allocation2] sm:$0xff]  ;;  %v1480_v52 = vld [vmem:[#allocation2 + $0x18] sm:$0xff]  ;;  %v1484_v53 = vld [vmem:[#allocation2 + $0x8] sm:$0xff] }
 0x143   : > { %540 = vmatpush.msra.mxu0 %v529_v33  ;;  %v624_v62 = vld [vmem:[%s1406_s24 + $0x78] sm:$0xff]  ;;  %v623_v63 = vld [vmem:[%s1406_s24 + $0x70] sm:$0xff]  ;;  %v622_v0 = vld [vmem:[%s1406_s24 + $0x68] sm:$0xff] }
 0x144   : > { %586 = vmatpush.msra.mxu1 %v573_v27  ;;  %625 = vmatpush.msra.mxu2 %v624_v62  ;;  %v621_v1 = vld [vmem:[%s1406_s24 + $0x60] sm:$0xff]  ;;  %v620_v2 = vld [vmem:[%s1406_s24 + $0x58] sm:$0xff]  ;;  %v619_v3 = vld [vmem:[%s1406_s24 + $0x50] sm:$0xff] }
 0x145   : > { %541 = vmatpush.msra.mxu0 %v528_v34  ;;  %v618_v4 = vld [vmem:[%s1406_s24 + $0x48] sm:$0xff]  ;;  %v617_v5 = vld [vmem:[%s1406_s24 + $0x40] sm:$0xff]  ;;  %v616_v6 = vld [vmem:[%s1406_s24 + $0x38] sm:$0xff] }
 0x146   : > { %587 = vmatpush.msra.mxu1 %v572_v29  ;;  %626 = vmatpush.msra.mxu2 %v623_v63  ;;  %v615_v7 = vld [vmem:[%s1406_s24 + $0x30] sm:$0xff]  ;;  %v614_v8 = vld [vmem:[%s1406_s24 + $0x28] sm:$0xff]  ;;  %v613_v9 = vld [vmem:[%s1406_s24 + $0x20] sm:$0xff] }
 0x147   : > { %542 = vmatpush.msra.mxu0 %v527_v36  ;;  %v612_v10 = vld [vmem:[%s1406_s24 + $0x18] sm:$0xff]  ;;  %v611_v11 = vld [vmem:[%s1406_s24 + $0x10] sm:$0xff]  ;;  %v610_v12 = vld [vmem:[%s1406_s24 + $0x8] sm:$0xff] }
 0x148   : > { %588 = vmatpush.msra.mxu1 %v571_v31  ;;  %627 = vmatpush.msra.mxu2 %v622_v0  ;;  %v609_v14 = vld [vmem:[%s1406_s24] sm:$0xff] }
 0x149   : > { %543 = vmatpush.msra.mxu0 %v526_v38  ;;  %v794_v0 = vld [vmem:[#allocation3] sm:$0xff] }
 0x14a   : > { %589 = vmatpush.msra.mxu1 %v570_v32  ;;  %628 = vmatpush.msra.mxu2 %v621_v1 }
 0x14b   : > { %544 = vmatpush.msra.mxu0 %v525_v41 }
 0x14c   : > { %590 = vmatpush.msra.mxu1 %v569_v35  ;;  %629 = vmatpush.msra.mxu2 %v620_v2 }
 0x14d   : > { %545 = vmatpush.msra.mxu0 %v524_v42 }
 0x14e   : > { %591 = vmatpush.msra.mxu1 %v568_v37  ;;  %630 = vmatpush.msra.mxu2 %v619_v3  ;;  %v795_v3 = vld [vmem:[#allocation3 + $0x18] sm:$0xff] }
 0x14f   : > { %546 = vmatpush.msra.mxu0 %v523_v44 }
 0x150   : > { %592 = vmatpush.msra.mxu1 %v567_v39  ;;  %631 = vmatpush.msra.mxu2 %v618_v4 }
 0x151   : > { %547 = vmatpush.msra.mxu0 %v522_v46 }
 0x152   : > { %593 = vmatpush.msra.mxu1 %v566_v40  ;;  %632 = vmatpush.msra.mxu2 %v617_v5 }
 0x153   : > { %548 = vmatpush.msra.mxu0 %v521_v48 }
 0x154   : > { %594 = vmatpush.msra.mxu1 %v565_v43  ;;  %633 = vmatpush.msra.mxu2 %v616_v6  ;;  %v796_v6 = vld [vmem:[#allocation3 + $0x8] sm:$0xff] }
 0x155   : > { %549 = vmatpush.msra.mxu0 %v520_v49 }
 0x156   : > { %595 = vmatpush.msra.mxu1 %v564_v45  ;;  %634 = vmatpush.msra.mxu2 %v615_v7 }
 0x157   : > { %596 = vmatmul.f32.vlgmr.msra.gmra.mxu1 %v1470_v47  ;;  %550 = vmatpush.msra.mxu0 %v519_v50 }
 0x158   : > { %551 = vmatmul.f32.vlgmr.msra.gmra.mxu0 %v1470_v47  ;;  %635 = vmatpush.msra.mxu2 %v614_v8 }
 0x15a   : > { %636 = vmatpush.msra.mxu2 %v613_v9  ;;  %v797_v9 = vld [vmem:[#allocation3 + $0x10] sm:$0xff] }
 0x15c   : > { %637 = vmatpush.msra.mxu2 %v612_v10 }
 0x15e   : > { %638 = vmatpush.msra.mxu2 %v611_v11 }
 0x15f   : > { %599 = vmatmul.f32.gmra.mxu1 %v1476_v51 }
 0x160   : > { %554 = vmatmul.f32.gmra.mxu0 %v1476_v51  ;;  %639 = vmatpush.msra.mxu2 %v610_v12 }
 0x162   : > { %640 = vmatpush.msra.mxu2 %v609_v14 }
 0x163   : > { %641 = vmatmul.f32.vlgmr.msra.gmra.mxu2 %v1470_v47  ;;  %v799_v47 = vld [vmem:[%s1411_s14 + $0x8] sm:$0xff] }
 0x164   : > { %1059 = vmatpush.msrb.mxu1 %v799_v47  ;;  %1060 = vmatpush.msrb.mxu2 %v799_v47 }
 0x165   : > { %826 = vmatpush.msrb.mxu0 %v799_v47 }
 0x167   : > { %602 = vmatmul.f32.gmra.mxu1 %v1480_v52 }
 0x168   : > { %557 = vmatmul.f32.gmra.mxu0 %v1480_v52 }
 0x16b   : > { %644 = vmatmul.f32.gmra.mxu2 %v1476_v51 }
 0x16f   : > { %605 = vmatmul.f32.gmra.mxu1 %v1484_v53 }
 0x170   : > { %560 = vmatmul.f32.gmra.mxu0 %v1484_v53 }
 0x173   : > { %647 = vmatmul.f32.gmra.mxu2 %v1480_v52 }
 0x17b   : > { %650 = vmatmul.f32.gmra.mxu2 %v1484_v53 }
 0x1d4   : > { %v597_v54 = vpop.f32.mrf.mxu1 }
 0x1d5   : > { %v552_v58 = vpop.f32.mrf.mxu0 }
 0x1dc   : > { %v600_v55 = vpop.f32.mrf.mxu1 }
 0x1dd   : > { %v555_v59 = vpop.f32.mrf.mxu0 }
 0x1e4   : > { %v603_v56 = vpop.f32.mrf.mxu1 }
 0x1e5   : > { %v558_v60 = vpop.f32.mrf.mxu0 }
 0x1e6   : > { %v642_v32 = vpop.f32.mrf.mxu2 }
 0x1ec   : > { %v606_v57 = vpop.f32.mrf.mxu1 }
 0x1ed   : > { %1031 = vmatpush.xpose.msk.msra.mxu3 %vm654_vm13, %v606_v57  ;;  %v561_v61 = vpop.f32.mrf.mxu0 }
 0x1ee   : > { %v645_v38 = vpop.f32.mrf.mxu2 }
 0x1f1   : > { %1032 = vmatpush.xpose.msk.msra.mxu3 %vm654_vm13, %v603_v56 }
 0x1f5   : > { %1033 = vmatpush.xpose.msk.msra.mxu3 %vm654_vm13, %v600_v55 }
 0x1f6   : > { %v648_v42 = vpop.f32.mrf.mxu2 }
 0x1f9   : > { %1034 = vmatpush.xpose.msk.msra.mxu3 %vm654_vm13, %v597_v54 }
 0x1fc   : > { %1035 = vmatmul.msk.f32.vlgmr.msra.gmra.mxu3 %vm654_vm13, %v552_v58 }
 0x1fe   : > { %v651_v45 = vpop.f32.mrf.mxu2 }
 0x1ff   : > { %777 = vmatpush.msrb.mxu3 %v651_v45 }
 0x201   : > { %778 = vmatpush.msrb.mxu3 %v648_v42 }
 0x203   : > { %779 = vmatpush.msrb.mxu3 %v645_v38 }
 0x204   : > { %1036 = vmatmul.msk.f32.gmra.mxu3 %vm654_vm13, %v555_v59  ;;  %v798_v59 = vld [vmem:[%s1411_s14] sm:$0xff] }
 0x205   : > { %780 = vmatpush.msrb.mxu3 %v642_v32  ;;  %827 = vmatpush.msrb.mxu0 %v798_v59 }
 0x206   : > { %1061 = vmatpush.msrb.mxu1 %v798_v59  ;;  %1062 = vmatpush.msrb.mxu2 %v798_v59 }
 0x20c   : > { %1037 = vmatmul.msk.f32.gmra.mxu3 %vm654_vm13, %v558_v60 }
 0x214   : > { %1038 = vmatmul.msk.f32.gmra.mxu3 %vm654_vm13, %v561_v61 }
 0x27f   : > { %v696_v13 = vpop.f32.mrf.mxu3 }
 0x280   : > { %v709_v15 = vsel %vm708_vm14, %v696_v13, -inf }
 0x281   : > { %710 = vmax.xlane.f32.xlu0 %v709_v15 }
 0x287   : > { %v699_v16 = vpop.f32.mrf.mxu3 }
 0x288   : > { %v712_v17 = vsel %vm708_vm14, %v699_v16, -inf }
 0x289   : > { %713 = vmax.xlane.f32.xlu0 %v712_v17 }
 0x28f   : > { %v702_v18 = vpop.f32.mrf.mxu3 }
 0x290   : > { %v715_v19 = vsel %vm708_vm14, %v702_v18, -inf }
 0x291   : > { %716 = vmax.xlane.f32.xlu1 %v715_v19 }
 0x297   : > { %v705_v20 = vpop.f32.mrf.mxu3 }
 0x298   : > { %v718_v21 = vsel %vm708_vm14, %v705_v20, -inf }
 0x299   : > { %719 = vmax.xlane.f32.xlu1 %v718_v21 }
 0x2f4   : > { %v711_v22 = vpop.xlane.xlu0 %710 }
 0x2f5   : > { %v721_v23 = vsub.f32 %v696_v13, %v711_v22 }
 0x2f7   : > { %v725_v24 = vmul.f32 1.442695, %v721_v23 }
 0x2f9   : > { %1150 = vpow2.f32 %v725_v24 }
 0x2fc   : > { %v714_v25 = vpop.xlane.xlu0 %713 }
 0x2fd   : > { %v722_v26 = vsub.f32 %v699_v16, %v714_v25 }
 0x2ff   : > { %v1151_v27 = vpop.eup %1150  ;;  %v727_v28 = vmul.f32 1.442695, %v722_v26 }
 0x300   : > { %v733_v29 = vsel %vm708_vm14, %v1151_v27, 0.0 }
 0x301   : > { %1152 = vpow2.f32 %v727_v28  ;;  %734 = vadd.xlane.f32.xlu2 %v733_v29 }
 0x304   : > { %v717_v30 = vpop.xlane.xlu1 %716 }
 0x305   : > { %v723_v31 = vsub.f32 %v702_v18, %v717_v30 }
 0x307   : > { %v1153_v33 = vpop.eup %1152  ;;  %v729_v34 = vmul.f32 1.442695, %v723_v31 }
 0x308   : > { %v736_v35 = vsel %vm708_vm14, %v1153_v33, 0.0 }
 0x309   : > { %1154 = vpow2.f32 %v729_v34  ;;  %737 = vadd.xlane.f32.xlu2 %v736_v35 }
 0x30c   : > { %v720_v36 = vpop.xlane.xlu1 %719 }
 0x30d   : > { %v724_v37 = vsub.f32 %v705_v20, %v720_v36 }
 0x30f   : > { %v1155_v39 = vpop.eup %1154  ;;  %v731_v40 = vmul.f32 1.442695, %v724_v37 }
 0x310   : > { %v739_v41 = vsel %vm708_vm14, %v1155_v39, 0.0 }
 0x311   : > { %1156 = vpow2.f32 %v731_v40  ;;  %740 = vadd.xlane.f32.xlu0 %v739_v41 }
 0x317   : > { %v1157_v43 = vpop.eup %1156 }
 0x318   : > { %v742_v44 = vsel %vm708_vm14, %v1157_v43, 0.0 }
 0x319   : > { %743 = vadd.xlane.f32.xlu1 %v742_v44 }
 0x374   : > { %v735_v46 = vpop.xlane.xlu2 %734 }
 0x375   : > { %1158 = vrcp.f32 %v735_v46 }
 0x37b   : > { %v1159_v48 = vpop.eup %1158 }
 0x37c   : > { %v738_v49 = vpop.xlane.xlu2 %737  ;;  %v749_v50 = vmul.f32 %v1159_v48, %v1151_v27 }
 0x37d   : > { %1160 = vrcp.f32 %v738_v49 }
 0x37e   : > { %1039 = vmatmul.msk.f32.vlgmr.msrb.gmra.mxu3 %vm708_vm14, %v749_v50 }
 0x383   : > { %v1161_v51 = vpop.eup %1160 }
 0x384   : > { %v741_v52 = vpop.xlane.xlu0 %740  ;;  %v750_v53 = vmul.f32 %v1161_v51, %v1153_v33 }
 0x385   : > { %1162 = vrcp.f32 %v741_v52 }
 0x386   : > { %1040 = vmatmul.msk.f32.gmra.mxu3 %vm708_vm14, %v750_v53 }
 0x38b   : > { %v1163_v54 = vpop.eup %1162 }
 0x38c   : > { %v744_v55 = vpop.xlane.xlu1 %743  ;;  %v751_v56 = vmul.f32 %v1163_v54, %v1155_v39 }
 0x38d   : > { %1164 = vrcp.f32 %v744_v55 }
 0x38e   : > { %1041 = vmatmul.msk.f32.gmra.mxu3 %vm708_vm14, %v751_v56 }
 0x393   : > { %v1165_v57 = vpop.eup %1164 }
 0x394   : > { %v752_v58 = vmul.f32 %v1165_v57, %v1157_v43 }
 0x396   : > { %1042 = vmatmul.msk.f32.gmra.mxu3 %vm708_vm14, %v752_v58 }
 0x401   : > { %v782_v60 = vpop.f32.mrf.mxu3 }
 0x402   : > { %1043 = vmatmul.msk.f32.vlgmr.msrb.gmra.mxu0 %vm654_vm13, %v782_v60 }
 0x409   : > { %v785_v61 = vpop.f32.mrf.mxu3 }
 0x40a   : > { %1044 = vmatmul.msk.f32.vlgmr.msrb.gmra.mxu1 %vm654_vm13, %v785_v61 }
 0x411   : > { %v788_v62 = vpop.f32.mrf.mxu3 }
 0x412   : > { %1045 = vmatmul.msk.f32.gmra.mxu1 %vm654_vm13, %v788_v62 }
 0x419   : > { %v791_v63 = vpop.f32.mrf.mxu3 }
 0x41a   : > { %1046 = vmatmul.msk.f32.vlgmr.msrb.gmra.mxu2 %vm654_vm13, %v791_v63 }
 0x47f   : > { %v829_v1 = vpop.f32.mrf.mxu0 }
 0x480   : > { %v841_v2 = vadd.f32 %v829_v1, %v794_v0 }
 0x482   : > { %845 = vst [vmem:[#allocation3] sm:$0xff] %v841_v2 }
 0x487   : > { %v832_v4 = vpop.f32.mrf.mxu1 }
 0x488   : > { %v842_v5 = vadd.f32 %v832_v4, %v795_v3 }
 0x48a   : > { %846 = vst [vmem:[#allocation3 + $0x18] sm:$0xff] %v842_v5 }
 0x48f   : > { %v835_v7 = vpop.f32.mrf.mxu1 }
 0x490   : > { %v843_v8 = vadd.f32 %v835_v7, %v796_v6 }
 0x492   : > { %847 = vst [vmem:[#allocation3 + $0x8] sm:$0xff] %v843_v8 }
 0x49c   : > { %852 = sbr.rel (%p1047_p1) target bundleno = 1197 (0x4ad), region = 60 }
 0x49d   : > { %v838_v10 = vpop.f32.mrf.mxu2 }
 0x49e   : > { %v844_v11 = vadd.f32 %v838_v10, %v797_v9 }
 0x4a0   : > { %848 = vst [vmem:[#allocation3 + $0x10] sm:$0xff] %v844_v11 }
 0x4a1   : > { %v853_v12 = vld [vmem:[%s1391_s19] sm:$0xff]  ;;  %v854_v16 = vld [vmem:[%s1391_s19 + $0x8] sm:$0xff]  ;;  %v858_v17 = vld [vmem:[#allocation3 + $0x18] sm:$0xff] }
 0x4a2   : > { %v857_v13 = vld [vmem:[#allocation3] sm:$0xff]  ;;  %v862_v18 = vadd.f32 %v858_v17, %v854_v16  ;;  %v855_v19 = vld [vmem:[%s1391_s19 + $0x10] sm:$0xff]  ;;  %v859_v20 = vld [vmem:[#allocation3 + $0x8] sm:$0xff] }
 0x4a3   : > { %v861_v14 = vadd.f32 %v857_v13, %v853_v12  ;;  %v1166_v15 = vld [vmem:[%s1599_s7] ss:$0 sm:$0xff]  ;;  %v856_v21 = vld [vmem:[%s1391_s19 + $0x18] sm:$0xff]  ;;  %v863_v23 = vadd.f32 %v859_v20, %v855_v19 }
 0x4a4   : > { %v870_v25 = vadd.f32 %v1166_v15, %v862_v18 }
 0x4a5   : > { %v869_v22 = vadd.f32 %v1166_v15, %v861_v14  ;;  %v871_v27 = vadd.f32 %v1166_v15, %v863_v23 }
 0x4a6   : > { %874 = vst [vmem:[%s1413_s0 + $0x8] sm:$0xff] %v870_v25 }
 0x4a7   : > { %v860_v24 = vld [vmem:[#allocation3 + $0x10] sm:$0xff]  ;;  %873 = vst [vmem:[%s1413_s0] sm:$0xff] %v869_v22 }
 0x4a8   : > { %v864_v26 = vadd.f32 %v860_v24, %v856_v21  ;;  %875 = vst [vmem:[%s1413_s0 + $0x10] sm:$0xff] %v871_v27 }
 0x4aa   : > { %v872_v28 = vadd.f32 %v1166_v15, %v864_v26 }
 0x4ac   : > { %876 = vst [vmem:[%s1413_s0 + $0x18] sm:$0xff] %v872_v28 }
 0x4ad PF: > { %s1058_s30 = sshll.u32 %s1249_s9, 5  ;;  %s890_s23 = sshll.u32 %s1413_s0, 4  ;;  %s891_s23 = int_to_ptr.vmem [resolvable:$true] %s890_s23 }
 0x4ae   : > { %s889_s22 = scalar_lea.hbm %s1600_s8, %s1058_s30  ;;  %s1620_s19 = sand.u32 1, %s1237_s28  }
 0x4af   : > { %s892_s25 = sshll.u32 %s889_s22, 4  ;;  %s878_s20 = scalar_lea.sflag [#allocation5], %s1620_s19  ;;  %s893_s25 = int_to_ptr.hbm [resolvable:$true] %s892_s25 }
 0x4b0   : > { %s1181_s24 = sshra.s32 %s893_s25, 4  ;;  %s1187_s9 = scalar_lea.hbm %s1600_s8, 64  ;;  %s1182_s24 = int_to_ptr.hbm [resolvable:$true] %s1181_s24 }
 0x4b1   : > { %s1183_s13 = scalar_lea.hbm %s1182_s24, 32  ;;  %p1188_p6 = scmp.lt.s32.totalorder %s1182_s24, %s1600_s8 }
 0x4b2   : > { %p1184_p2 = scmp.ne.s32.totalorder %s1182_s24, %s1183_s13  ;;  %p1189_p7 = scmp.lt.s32.totalorder %s1187_s9, %s1183_s13 }
 0x4b4   : > { %p1185_p4 = pnand %p1184_p2, %p1361_p3  ;;  %p1190_p8 = por %p1189_p7, %p1188_p6 }
 0x4b6   : > { %p1186_p5 = pneg %p1185_p4 }
 0x4b8   : > { %p1191_p10 = pnand %p1190_p8, %p1186_p5 }
 0x4ba   : > { %1194 = shalt.err (!%p1191_p10)
}
 0x4bb   : > { %s1265_s0 = smov 128   ;;  %s1266_s15 = smov 8  }
 0x4bc   : > { %1063 = dma.vmem_to_hbm [thread:$0]  (%p1361_p3), %s891_s23, 512, %s893_s25, %s878_s20, %s1265_s0, %s1265_s0, %s1266_s15  }
 0x4bd PF: > { %s1621_s16 = sld [smem:[#allocation7_spill]]  ;;  %p1069_p11 = scmp.ge.s32.totalorder %s1261_s12, 2 }
 0x4bf   : > { %p1066_p12 = pnand %p1069_p11, %p1371_p9 }
 0x4c1   : > { %p1067_p13 = pneg %p1066_p12 }
 0x4c3   : > { %s907_s11 = sand.u32 1, %s1621_s16  }
 0x4c4   : > { %s908_s30 = scalar_lea.sflag [#allocation5], %s907_s11 }
 0x4c5   : > { %1228 = dma.done.wait (%p1067_p13), %s908_s30, 512  }
 0x4c6   : > { %1230 = vsyncadd (%p1067_p13), %s908_s30, 4294966784  ;;  %s21_s12 = sadd.s32 1, %s1261_s12   ;;  %s1623_s18 = sld [smem:[#allocation8_spill]] }
 0x4c7   : > { %p18_p0 = scmp.ge.s32.totalorder %s21_s12, 18   ;;  %s1624_s29 = sld [smem:[#allocation14_spill]] }
 0x4c8   : > { %s1625_s30 = sld [smem:[#allocation9_spill]]  ;;  %s1629_s27 = smov %s1237_s28 }
 0x4c9   : > { %s1626_s9 = sld [smem:[#allocation10_spill]]  ;;  %20 = sbr.rel (!%p18_p0) target bundleno = 7 (0x7), region = 107 }
 0x4ca   : > { %s1627_s10 = sld [smem:[#allocation11_spill]] }
 0x4cb   : > { %s1628_s11 = sld [smem:[#allocation12_spill]] }
 0x4cc   : > { %s1630_s28 = smov %s1623_s18 }
 0x4ce   :  { %914 = vsyncpa [#allocation5], 1 }
 0x4cf   :  { %916 = vsyncpa [#allocation5 + $0x1], 1 }

</bundles_post_ra>
